<compile_context>
chip_gen: v7x
topology: tpu7x:2x2x1
jax: 0.10.0
libtpu: 0.0.40
codegen_flags: <defaults>
</compile_context>

<pallas_src>
import jax
import jax.numpy as jnp
import numpy as np
from jax.experimental import pallas as pl
from jax.experimental.pallas import tpu as pltpu

LN_EPS = 1e-5                            # torch.nn.LayerNorm default eps

_VMEM_LIMIT_BYTES = 48 * 1024 * 1024     # raised scoped-VMEM cap (safe v5e/v6e/v7x)
_TILE_BYTE_BUDGET = 32 * 1024 * 1024     # budget for the double-buffered block tiles

# Corner enumeration used by the fused kernel: (dd, hh) pairs.  Within each
# corner's 2C chunk the layout is [ww=0 channels | ww=1 channels].
_CORNERS = ((0, 0), (0, 1), (1, 0), (1, 1))
# torch concat order x0..x7 expressed as (dd, hh, ww) corner bits.
_TORCH_ORDER = ((0, 0, 0), (1, 0, 0), (0, 1, 0), (0, 0, 1),
                (0, 1, 1), (1, 0, 1), (1, 1, 0), (1, 1, 1))


def _fused_channel_perm(C):
    """Index array mapping the fused kernel's (dd, hh, ww, c) channel order
    back onto the torch concat order, so LN params / weight rows can be
    pre-permuted on the host (tiny one-off gather)."""
    idx = []
    for j in range(8):
        dd, hh = _CORNERS[j // 2]
        ww = j % 2
        p = _TORCH_ORDER.index((dd, hh, ww))
        idx.append(np.arange(p * C, (p + 1) * C, dtype=np.int32))
    return np.concatenate(idx)


def _largest_divisor_leq(n, cap):
    cap = max(1, min(n, int(cap)))
    for d in range(cap, 0, -1):
        if n % d == 0:
            return d
    return 1


def _layernorm_f32(x, gamma, beta):
    mean = jnp.mean(x, axis=-1, keepdims=True)
    cen = x - mean
    var = jnp.mean(cen * cen, axis=-1, keepdims=True)        # biased, like torch
    return cen * jax.lax.rsqrt(var + LN_EPS) * gamma + beta


# ----------------------------------------------------------------------------
# Kernels
# ----------------------------------------------------------------------------
def _fused_merge_kernel(x00_ref, x01_ref, x10_ref, x11_ref,
                        g_ref, b_ref, w_ref, o_ref):
    """Fused 2x2x2 gather + LayerNorm(8C) + Linear(8C -> 2C) on one tile.

    Each corner ref is (td, th, W2, 2C).  W2 % 8 == 0 is guaranteed by the
    wrapper, so the row-collapse reshapes are pure layout views.
    """
    td, th, w2, c2 = x00_ref.shape
    rows = td * th * w2
    parts = [r[...].reshape(rows, c2)
             for r in (x00_ref, x01_ref, x10_ref, x11_ref)]
    x = jnp.concatenate(parts, axis=-1).astype(jnp.float32)   # (rows, 8C)
    y = _layernorm_f32(x, g_ref[...], b_ref[...])
    out = jnp.dot(y, w_ref[...], preferred_element_type=jnp.float32)
    o_ref[...] = out.reshape(td, th, w2, out.shape[-1]).astype(o_ref.dtype)


def _flat_merge_kernel(x_ref, g_ref, b_ref, w_ref, o_ref):
    """LayerNorm(8C) + Linear(8C -> 2C) on a flat (tm, 8C) token tile."""
    x = x_ref[...].astype(jnp.float32)
    y = _layernorm_f32(x, g_ref[...], b_ref[...])
    o_ref[...] = jnp.dot(y, w_ref[...],
                         preferred_element_type=jnp.float32).astype(o_ref.dtype)


# ----------------------------------------------------------------------------
# pallas_call wrappers
# ----------------------------------------------------------------------------
def _fused_call(x, gamma32, beta32, w_t, B, D2, H2, W2, C, C2out):
    C2in, C8 = 2 * C, 8 * C
    md = B * D2                              # merged (batch, D/2) axis
    N = md * H2 * W2
    itm = jnp.dtype(x.dtype).itemsize

    # Pre-permute params so the kernel's corner-major channel order matches
    # the torch concat order exactly (LN is permutation-invariant otherwise).
    perm = _fused_channel_perm(C)
    g2 = gamma32[perm].reshape(1, C8)
    b2 = beta32[perm].reshape(1, C8)
    wt = w_t[perm, :]                        # (8C, 2Cout)

    # Free view of the padded input: (B*D2, dd, H2, hh, W2, 2C).
    xv = x.reshape(md, 2, H2, 2, W2, C2in)

    # Tile sizing: as many token rows per grid step as the VMEM budget allows.
    weight_bytes = 2 * C8 * C2out * 4
    budget = max(1, _TILE_BYTE_BUDGET - weight_bytes)
    bytes_per_row = 2 * (C8 + C2out) * max(itm, 4)   # double-buffered in + out
    row_budget = max(W2, min(4096, budget // bytes_per_row))
    th = _largest_divisor_leq(H2, max(1, row_budget // W2))
    td = _largest_divisor_leq(md, max(1, row_budget // (W2 * th)))
    grid = (md // td, H2 // th)

    def corner_spec(dd, hh):
        def idx(i, j):
            return (i, dd, j, hh, 0, 0)
        return pl.BlockSpec((td, None, th, None, W2, C2in), idx)

    in_specs = [corner_spec(dd, hh) for dd, hh in _CORNERS]
    in_specs += [pl.BlockSpec((1, C8), lambda i, j: (0, 0)),
                 pl.BlockSpec((1, C8), lambda i, j: (0, 0)),
                 pl.BlockSpec((C8, C2out), lambda i, j: (0, 0))]
    out_spec = pl.BlockSpec((td, th, W2, C2out), lambda i, j: (i, j, 0, 0))

    cost = pl.CostEstimate(
        flops=2 * N * C8 * C2out,
        transcendentals=N,
        bytes_accessed=N * (C8 + C2out) * itm + (C8 * C2out + 2 * C8) * 4)

    out = pl.pallas_call(
        _fused_merge_kernel,
        out_shape=jax.ShapeDtypeStruct((md, H2, W2, C2out), x.dtype),
        grid=grid,
        in_specs=in_specs,
        out_specs=out_spec,
        compiler_params=pltpu.CompilerParams(
            dimension_semantics=("parallel", "parallel"),
            vmem_limit_bytes=_VMEM_LIMIT_BYTES),
        cost_estimate=cost,
    )(xv, xv, xv, xv, g2, b2, wt)
    return out.reshape(B, D2, H2, W2, C2out)


def _flat_call(x, gamma32, beta32, w_t, B, D2, H2, W2, C, C2out):
    """Fallback: gather/concat in JAX, big flat row tiles in the kernel."""
    C8 = 8 * C
    x0 = x[:, 0::2, 0::2, 0::2, :]
    x1 = x[:, 1::2, 0::2, 0::2, :]
    x2 = x[:, 0::2, 1::2, 0::2, :]
    x3 = x[:, 0::2, 0::2, 1::2, :]
    x4 = x[:, 0::2, 1::2, 1::2, :]
    x5 = x[:, 1::2, 0::2, 1::2, :]
    x6 = x[:, 1::2, 1::2, 0::2, :]
    x7 = x[:, 1::2, 1::2, 1::2, :]
    xm = jnp.concatenate([x0, x1, x2, x3, x4, x5, x6, x7], axis=-1)
    tokens = xm.reshape(-1, C8)
    N = tokens.shape[0]
    itm = jnp.dtype(x.dtype).itemsize

    weight_bytes = 2 * C8 * C2out * 4
    budget = max(1, _TILE_BYTE_BUDGET - weight_bytes)
    bytes_per_row = 2 * (C8 + C2out) * max(itm, 4)
    row_budget = budget // bytes_per_row
    tm = max(256, min(1024, (row_budget // 256) * 256))   # MXU-aligned row tiles
    if N < tm:
        tm = N                                            # single full-extent block

    cost = pl.CostEstimate(
        flops=2 * N * C8 * C2out,
        transcendentals=N,
        bytes_accessed=N * (C8 + C2out) * itm + (C8 * C2out + 2 * C8) * 4)

    out = pl.pallas_call(
        _flat_merge_kernel,
        out_shape=jax.ShapeDtypeStruct((N, C2out), x.dtype),
        grid=(pl.cdiv(N, tm),),
        in_specs=[pl.BlockSpec((tm, C8), lambda i: (i, 0)),
                  pl.BlockSpec((1, C8), lambda i: (0, 0)),
                  pl.BlockSpec((1, C8), lambda i: (0, 0)),
                  pl.BlockSpec((C8, C2out), lambda i: (0, 0))],
        out_specs=pl.BlockSpec((tm, C2out), lambda i: (i, 0)),
        compiler_params=pltpu.CompilerParams(
            dimension_semantics=("parallel",),
            vmem_limit_bytes=_VMEM_LIMIT_BYTES),
        cost_estimate=cost,
    )(tokens, gamma32.reshape(1, C8), beta32.reshape(1, C8), w_t)
    return out.reshape(B, D2, H2, W2, C2out)


# ----------------------------------------------------------------------------
# Public forward
# ----------------------------------------------------------------------------
def patch_merging_3d(x, gamma, beta, w):
    """PatchMerging3D.forward.

    x:     (B, D, H, W, C)
    gamma: (8C,)   LayerNorm weight
    beta:  (8C,)   LayerNorm bias
    w:     (2C, 8C) nn.Linear(8*dim, 2*dim, bias=False).weight
    returns (B, ceil(D/2), ceil(H/2), ceil(W/2), 2C)
    """
    B, D, H, W, C = x.shape
    # Intended padding semantics: zero-pad D/H/W up to even.  (The original
    # torch F.pad argument order pads C instead of D and breaks for odd D;
    # for all inputs the torch module can run, this is identical.)
    if (D % 2) or (H % 2) or (W % 2):
        x = jnp.pad(x, ((0, 0), (0, D % 2), (0, H % 2), (0, W % 2), (0, 0)))
        B, D, H, W, C = x.shape
    D2, H2, W2 = D // 2, H // 2, W // 2
    C2out = w.shape[0]

    gamma32 = gamma.astype(jnp.float32)
    beta32 = beta.astype(jnp.float32)
    w_t = w.T.astype(jnp.float32)            # (8C, 2C)

    if W2 % 8 == 0:
        # Fused gather + norm + projection (no HBM materialization of (N, 8C)).
        return _fused_call(x, gamma32, beta32, w_t, B, D2, H2, W2, C, C2out)
    # Fallback when the in-kernel row collapse is not sublane-aligned.
    return _flat_call(x, gamma32, beta32, w_t, B, D2, H2, W2, C, C2out)


# ----------------------------------------------------------------------------
# Pure-JAX reference + self-test
# ----------------------------------------------------------------------------
def _reference(x, gamma, beta, w):
    B, D, H, W, C = x.shape
    if (D % 2) or (H % 2) or (W % 2):
        x = jnp.pad(x, ((0, 0), (0, D % 2), (0, H % 2), (0, W % 2), (0, 0)))
    x0 = x[:, 0::2, 0::2, 0::2, :]
    x1 = x[:, 1::2, 0::2, 0::2, :]
    x2 = x[:, 0::2, 1::2, 0::2, :]
    x3 = x[:, 0::2, 0::2, 1::2, :]
    x4 = x[:, 0::2, 1::2, 1::2, :]
    x5 = x[:, 1::2, 0::2, 1::2, :]
    x6 = x[:, 1::2, 1::2, 0::2, :]
    x7 = x[:, 1::2, 1::2, 1::2, :]
    xm = jnp.concatenate([x0, x1, x2, x3, x4, x5, x6, x7], axis=-1)
    xm = xm.astype(jnp.float32)
    mean = jnp.mean(xm, axis=-1, keepdims=True)
    cen = xm - mean
    var = jnp.mean(cen * cen, axis=-1, keepdims=True)
    y = cen * jax.lax.rsqrt(var + LN_EPS) * gamma.astype(jnp.float32) \
        + beta.astype(jnp.float32)
    return jnp.einsum("bdhwc,oc->bdhwo", y, w.astype(jnp.float32),
                      precision=jax.lax.Precision.HIGHEST)


if __name__ == "__main__":
    def run_case(B, D, H, W, C, key):
        kx, kg, kb, kw = jax.random.split(key, 4)
        x = jax.random.normal(kx, (B, D, H, W, C), dtype=jnp.float32)
        gamma = 1.0 + 0.1 * jax.random.normal(kg, (8 * C,), dtype=jnp.float32)
        beta = 0.1 * jax.random.normal(kb, (8 * C,), dtype=jnp.float32)
        w = jax.random.normal(kw, (2 * C, 8 * C), dtype=jnp.float32) / np.sqrt(8 * C)

        out = jax.block_until_ready(jax.jit(patch_merging_3d)(x, gamma, beta, w))
        ref = jax.block_until_ready(_reference(x, gamma, beta, w))
        Dp, Hp, Wp = D + D % 2, H + H % 2, W + W % 2
        assert out.shape == (B, Dp // 2, Hp // 2, Wp // 2, 2 * C), out.shape
        np.testing.assert_allclose(np.asarray(out), np.asarray(ref),
                                   atol=1e-3, rtol=1e-3)

    key = jax.random.PRNGKey(0)
    k1, k2 = jax.random.split(key)
    # Even shapes, W/2 % 8 == 0  -> fused gather + LN + projection kernel.
    run_case(2, 4, 8, 16, 64, k1)
    # Odd D / small W (exercises the padding fix and the flat fallback path).
    run_case(1, 3, 6, 10, 32, k2)
    print("KERNEL_OK")
</pallas_src>

<mosaic_0001>
module attributes {stable_mosaic.version = 11 : i64} {
  func.func @_fused_merge_kernel(%arg0: i32, %arg1: i32, %arg2: memref<4x1x4x1x8x128xf32, #tpu.memory_space<vmem>>, %arg3: memref<4x1x4x1x8x128xf32, #tpu.memory_space<vmem>>, %arg4: memref<4x1x4x1x8x128xf32, #tpu.memory_space<vmem>>, %arg5: memref<4x1x4x1x8x128xf32, #tpu.memory_space<vmem>>, %arg6: memref<1x512xf32, #tpu.memory_space<vmem>>, %arg7: memref<1x512xf32, #tpu.memory_space<vmem>>, %arg8: memref<512x128xf32, #tpu.memory_space<vmem>>, %arg9: memref<4x4x8x128xf32, #tpu.memory_space<vmem>>) attributes {dimension_semantics = [#tpu.dimension_semantics<parallel>, #tpu.dimension_semantics<parallel>], iteration_bounds = array<i64: 1, 1>, scalar_prefetch = 0 : i64, scratch_operands = 0 : i64, tpu.core_type = #tpu.core_type<tc>, window_params = [{transform_indices = @transform_0, window_bounds = array<i64: 4, 1, 4, 1, 8, 128>}, {transform_indices = @transform_1, window_bounds = array<i64: 4, 1, 4, 1, 8, 128>}, {transform_indices = @transform_2, window_bounds = array<i64: 4, 1, 4, 1, 8, 128>}, {transform_indices = @transform_3, window_bounds = array<i64: 4, 1, 4, 1, 8, 128>}, {pipeline_mode = #tpu.pipeline_mode<synchronous>, transform_indices = @transform_4, window_bounds = array<i64: 1, 512>}, {pipeline_mode = #tpu.pipeline_mode<synchronous>, transform_indices = @transform_5, window_bounds = array<i64: 1, 512>}, {pipeline_mode = #tpu.pipeline_mode<synchronous>, transform_indices = @transform_6, window_bounds = array<i64: 512, 128>}, {transform_indices = @transform_7, window_bounds = array<i64: 4, 4, 8, 128>}]} {
    %c0 = arith.constant 0 : index
    %c0_0 = arith.constant 0 : index
    %c0_1 = arith.constant 0 : index
    %c0_2 = arith.constant 0 : index
    %c0_3 = arith.constant 0 : index
    %c0_4 = arith.constant 0 : index
    %0 = vector.load %arg2[%c0, %c0_0, %c0_1, %c0_2, %c0_3, %c0_4] : memref<4x1x4x1x8x128xf32, #tpu.memory_space<vmem>>, vector<4x1x4x1x8x128xf32>
    %1 = vector.shape_cast %0 : vector<4x1x4x1x8x128xf32> to vector<4x4x8x128xf32>
    %2 = vector.shape_cast %1 : vector<4x4x8x128xf32> to vector<128x128xf32>
    %c0_5 = arith.constant 0 : index
    %c0_6 = arith.constant 0 : index
    %c0_7 = arith.constant 0 : index
    %c0_8 = arith.constant 0 : index
    %c0_9 = arith.constant 0 : index
    %c0_10 = arith.constant 0 : index
    %3 = vector.load %arg3[%c0_5, %c0_6, %c0_7, %c0_8, %c0_9, %c0_10] : memref<4x1x4x1x8x128xf32, #tpu.memory_space<vmem>>, vector<4x1x4x1x8x128xf32>
    %4 = vector.shape_cast %3 : vector<4x1x4x1x8x128xf32> to vector<4x4x8x128xf32>
    %5 = vector.shape_cast %4 : vector<4x4x8x128xf32> to vector<128x128xf32>
    %c0_11 = arith.constant 0 : index
    %c0_12 = arith.constant 0 : index
    %c0_13 = arith.constant 0 : index
    %c0_14 = arith.constant 0 : index
    %c0_15 = arith.constant 0 : index
    %c0_16 = arith.constant 0 : index
    %6 = vector.load %arg4[%c0_11, %c0_12, %c0_13, %c0_14, %c0_15, %c0_16] : memref<4x1x4x1x8x128xf32, #tpu.memory_space<vmem>>, vector<4x1x4x1x8x128xf32>
    %7 = vector.shape_cast %6 : vector<4x1x4x1x8x128xf32> to vector<4x4x8x128xf32>
    %8 = vector.shape_cast %7 : vector<4x4x8x128xf32> to vector<128x128xf32>
    %c0_17 = arith.constant 0 : index
    %c0_18 = arith.constant 0 : index
    %c0_19 = arith.constant 0 : index
    %c0_20 = arith.constant 0 : index
    %c0_21 = arith.constant 0 : index
    %c0_22 = arith.constant 0 : index
    %9 = vector.load %arg5[%c0_17, %c0_18, %c0_19, %c0_20, %c0_21, %c0_22] : memref<4x1x4x1x8x128xf32, #tpu.memory_space<vmem>>, vector<4x1x4x1x8x128xf32>
    %10 = vector.shape_cast %9 : vector<4x1x4x1x8x128xf32> to vector<4x4x8x128xf32>
    %11 = vector.shape_cast %10 : vector<4x4x8x128xf32> to vector<128x128xf32>
    %12 = tpu.concatenate %2, %5, %8, %11 in 1 : vector<128x128xf32>, vector<128x128xf32>, vector<128x128xf32>, vector<128x128xf32> -> vector<128x512xf32>
    %c0_23 = arith.constant 0 : index
    %c0_24 = arith.constant 0 : index
    %13 = vector.load %arg6[%c0_23, %c0_24] : memref<1x512xf32, #tpu.memory_space<vmem>>, vector<1x512xf32>
    %c0_25 = arith.constant 0 : index
    %c0_26 = arith.constant 0 : index
    %14 = vector.load %arg7[%c0_25, %c0_26] : memref<1x512xf32, #tpu.memory_space<vmem>>, vector<1x512xf32>
    %cst = arith.constant dense<0.000000e+00> : vector<128xf32>
    %15 = vector.multi_reduction <add>, %12, %cst [1] : vector<128x512xf32> to vector<128xf32>
    %16 = vector.shape_cast %15 : vector<128xf32> to vector<128x1xf32>
    %cst_27 = arith.constant 5.120000e+02 : f32
    %17 = vector.broadcast %cst_27 : f32 to vector<128x1xf32>
    %18 = arith.divf %16, %17 : vector<128x1xf32>
    %19 = vector.broadcast %18 : vector<128x1xf32> to vector<128x512xf32>
    %20 = arith.subf %12, %19 : vector<128x512xf32>
    %21 = arith.mulf %20, %20 : vector<128x512xf32>
    %cst_28 = arith.constant dense<0.000000e+00> : vector<128xf32>
    %22 = vector.multi_reduction <add>, %21, %cst_28 [1] : vector<128x512xf32> to vector<128xf32>
    %23 = vector.shape_cast %22 : vector<128xf32> to vector<128x1xf32>
    %cst_29 = arith.constant 5.120000e+02 : f32
    %24 = vector.broadcast %cst_29 : f32 to vector<128x1xf32>
    %25 = arith.divf %23, %24 : vector<128x1xf32>
    %cst_30 = arith.constant 9.99999974E-6 : f32
    %26 = vector.broadcast %cst_30 : f32 to vector<128x1xf32>
    %27 = arith.addf %25, %26 : vector<128x1xf32>
    %28 = math.rsqrt %27 : vector<128x1xf32>
    %29 = vector.broadcast %28 : vector<128x1xf32> to vector<128x512xf32>
    %30 = arith.mulf %20, %29 : vector<128x512xf32>
    %31 = vector.broadcast %13 : vector<1x512xf32> to vector<128x512xf32>
    %32 = arith.mulf %30, %31 : vector<128x512xf32>
    %33 = vector.broadcast %14 : vector<1x512xf32> to vector<128x512xf32>
    %34 = arith.addf %32, %33 : vector<128x512xf32>
    %c0_31 = arith.constant 0 : index
    %c0_32 = arith.constant 0 : index
    %35 = vector.load %arg8[%c0_31, %c0_32] : memref<512x128xf32, #tpu.memory_space<vmem>>, vector<512x128xf32>
    %cst_33 = arith.constant dense<0.000000e+00> : vector<128x128xf32>
    %36 = tpu.matmul %34, %35, %cst_33 {dimension_numbers = #tpu.dot_dimension_numbers<[1], [0], [0], [1], [0, 0, 1, 1], [], []>} : vector<128x512xf32>, vector<512x128xf32>, vector<128x128xf32> -> vector<128x128xf32>
    %37 = vector.shape_cast %36 : vector<128x128xf32> to vector<4x4x8x128xf32>
    %c0_34 = arith.constant 0 : index
    %c0_35 = arith.constant 0 : index
    %c0_36 = arith.constant 0 : index
    %c0_37 = arith.constant 0 : index
    %38 = vector.load %arg9[%c0_34, %c0_35, %c0_36, %c0_37] : memref<4x4x8x128xf32, #tpu.memory_space<vmem>>, vector<4x4x8x128xf32>
    tpu.vector_store %arg9[%c0_34, %c0_35, %c0_36, %c0_37], %37 {strides = array<i32>} : memref<4x4x8x128xf32, #tpu.memory_space<vmem>>, vector<4x4x8x128xf32>,
    return
  }
  func.func @transform_0(%arg0: i32, %arg1: i32) -> (i32, i32, i32, i32, i32, i32) {
    %c0_i32 = arith.constant 0 : i32
    %c0_i32_0 = arith.constant 0 : i32
    %c0_i32_1 = arith.constant 0 : i32
    %c0_i32_2 = arith.constant 0 : i32
    %c0_i32_3 = arith.constant 0 : i32
    return %arg0, %c0_i32, %arg1, %c0_i32_0, %c0_i32_1, %c0_i32_2 : i32, i32, i32, i32, i32, i32
  }
  func.func @transform_1(%arg0: i32, %arg1: i32) -> (i32, i32, i32, i32, i32, i32) {
    %c0_i32 = arith.constant 0 : i32
    %c1_i32 = arith.constant 1 : i32
    %c0_i32_0 = arith.constant 0 : i32
    %c0_i32_1 = arith.constant 0 : i32
    %c0_i32_2 = arith.constant 0 : i32
    return %arg0, %c0_i32, %arg1, %c1_i32, %c0_i32_0, %c0_i32_1 : i32, i32, i32, i32, i32, i32
  }
  func.func @transform_2(%arg0: i32, %arg1: i32) -> (i32, i32, i32, i32, i32, i32) {
    %c1_i32 = arith.constant 1 : i32
    %c0_i32 = arith.constant 0 : i32
    %c0_i32_0 = arith.constant 0 : i32
    %c0_i32_1 = arith.constant 0 : i32
    %c0_i32_2 = arith.constant 0 : i32
    return %arg0, %c1_i32, %arg1, %c0_i32, %c0_i32_0, %c0_i32_1 : i32, i32, i32, i32, i32, i32
  }
  func.func @transform_3(%arg0: i32, %arg1: i32) -> (i32, i32, i32, i32, i32, i32) {
    %c1_i32 = arith.constant 1 : i32
    %c1_i32_0 = arith.constant 1 : i32
    %c0_i32 = arith.constant 0 : i32
    %c0_i32_1 = arith.constant 0 : i32
    %c0_i32_2 = arith.constant 0 : i32
    return %arg0, %c1_i32, %arg1, %c1_i32_0, %c0_i32, %c0_i32_1 : i32, i32, i32, i32, i32, i32
  }
  func.func @transform_4(%arg0: i32, %arg1: i32) -> (i32, i32) {
    %c0_i32 = arith.constant 0 : i32
    %c0_i32_0 = arith.constant 0 : i32
    %c0_i32_1 = arith.constant 0 : i32
    return %c0_i32, %c0_i32_0 : i32, i32
  }
  func.func @transform_5(%arg0: i32, %arg1: i32) -> (i32, i32) {
    %c0_i32 = arith.constant 0 : i32
    %c0_i32_0 = arith.constant 0 : i32
    %c0_i32_1 = arith.constant 0 : i32
    return %c0_i32, %c0_i32_0 : i32, i32
  }
  func.func @transform_6(%arg0: i32, %arg1: i32) -> (i32, i32) {
    %c0_i32 = arith.constant 0 : i32
    %c0_i32_0 = arith.constant 0 : i32
    %c0_i32_1 = arith.constant 0 : i32
    return %c0_i32, %c0_i32_0 : i32, i32
  }
  func.func @transform_7(%arg0: i32, %arg1: i32) -> (i32, i32, i32, i32) {
    %c0_i32 = arith.constant 0 : i32
    %c0_i32_0 = arith.constant 0 : i32
    %c0_i32_1 = arith.constant 0 : i32
    return %arg0, %arg1, %c0_i32, %c0_i32_0 : i32, i32, i32, i32
  }
}

</mosaic_0001>

<bundles_post_ra>
// kernel: patch_merging_3d.1
= control target key start
LH: loop header
LB: loop body
LE: loop exit
PB: predicated region body
PF: predicated region fallthrough
CT: control target
= control target key end

     0   :  { %s3011_s0 = inlined_call_operand.vmem [shape: f32[4,2,4,2,8,128], index: 0, kind: input, shape index: {}, may-alias: {0,1,2,3}]   ;;  %s3012_s1 = inlined_call_operand.vmem [shape: f32[4,2,4,2,8,128], index: 1, kind: input, shape index: {}, may-alias: {0,1,2,3}]   ;;  %s3013_s2 = inlined_call_operand.vmem [shape: f32[4,2,4,2,8,128], index: 2, kind: input, shape index: {}, may-alias: {0,1,2,3}]   ;;  %s3014_s3 = inlined_call_operand.vmem [shape: f32[4,2,4,2,8,128], index: 3, kind: input, shape index: {}, may-alias: {0,1,2,3}]   ;;  %s3015_s4 = inlined_call_operand.vmem [shape: f32[1,512], index: 4, kind: input, shape index: {}]   ;;  %s3016_s5 = inlined_call_operand.vmem [shape: f32[1,512], index: 5, kind: input, shape index: {}]   ;;  %s3017_s6 = inlined_call_operand.vmem [shape: f32[512,128], index: 6, kind: input, shape index: {}]   ;;  %s3018_s7 = inlined_call_operand.hbm [shape: f32[4,4,8,128], index: 7, kind: output, shape index: {}]  }
   0x1   :  { %v1838_v0 = vld [vmem:[%s3011_s0] sm:$0xff]  ;;  %v1843_v1 = vld [vmem:[%s3012_s1 + $0x8] sm:$0xff]  ;;  %v1877_v9 = vld [vmem:[%s3011_s0 + $0x10] sm:$0xff] }
   0x2   :  { %v1848_v2 = vld [vmem:[%s3013_s2 + $0x40] sm:$0xff]  ;;  %v472_v3 = vadd.f32 %v1843_v1, %v1838_v0  ;;  %v1860_v5 = vld [vmem:[%s3012_s1 + $0x28] sm:$0xff]  ;;  %v1888_v12 = vld [vmem:[%s3012_s1 + $0x18] sm:$0xff] }
   0x3   :  { %v1855_v4 = vld [vmem:[%s3011_s0 + $0x20] sm:$0xff]  ;;  %v1865_v6 = vld [vmem:[%s3014_s3 + $0x48] sm:$0xff]  ;;  %v1893_v13 = vld [vmem:[%s3013_s2 + $0x50] sm:$0xff]  ;;  %v477_v15 = vadd.f32 %v1888_v12, %v1877_v9 }
   0x4   :  { %v1870_v7 = vld [vmem:[%s3013_s2 + $0x60] sm:$0xff]  ;;  %v482_v8 = vadd.f32 %v1860_v5, %v1855_v4  ;;  %v473_v10 = vadd.f32 %v1848_v2, %v472_v3  ;;  %v1883_v11 = vld [vmem:[%s3014_s3 + $0x68] sm:$0xff]  ;;  %v1901_v16 = vld [vmem:[%s3011_s0 + $0x30] sm:$0xff] }
   0x5   :  { %v1906_v17 = vld [vmem:[%s3012_s1 + $0x38] sm:$0xff]  ;;  %v1911_v18 = vld [vmem:[%s3013_s2 + $0x70] sm:$0xff]  ;;  %v1924_v22 = vld [vmem:[%s3011_s0 + $0x80] sm:$0xff]  ;;  %v478_v25 = vadd.f32 %v1893_v13, %v477_v15 }
   0x6   :  { %v483_v14 = vadd.f32 %v1870_v7, %v482_v8  ;;  %v474_v19 = vadd.f32 %v1865_v6, %v473_v10  ;;  %v1917_v20 = vld [vmem:[%s3014_s3 + $0x58] sm:$0xff]  ;;  %v487_v21 = vadd.f32 %v1906_v17, %v1901_v16  ;;  %v1929_v23 = vld [vmem:[%s3012_s1 + $0x88] sm:$0xff]  ;;  %v1941_v27 = vld [vmem:[%s3013_s2 + $0xc0] sm:$0xff] }
   0x7   :  { %v1936_v26 = vld [vmem:[%s3014_s3 + $0x78] sm:$0xff]  ;;  %v492_v28 = vadd.f32 %v1929_v23, %v1924_v22  ;;  %v1948_v29 = vld [vmem:[%s3011_s0 + $0x90] sm:$0xff]  ;;  %v1954_v31 = vld [vmem:[%s3014_s3 + $0xc8] sm:$0xff]  ;;  %v479_v34 = vadd.f32 %v1917_v20, %v478_v25 }
   0x8   :  { %v484_v24 = vadd.f32 %v1883_v11, %v483_v14  ;;  %475 = vadd.xlane.f32.xlu0 %v474_v19  ;;  %v488_v30 = vadd.f32 %v1911_v18, %v487_v21  ;;  %v1959_v32 = vld [vmem:[%s3012_s1 + $0x98] sm:$0xff]  ;;  %v1964_v33 = vld [vmem:[%s3013_s2 + $0xd0] sm:$0xff]  ;;  %v1973_v37 = vld [vmem:[%s3011_s0 + $0xa0] sm:$0xff] }
   0x9   :  { %v493_v35 = vadd.f32 %v1941_v27, %v492_v28  ;;  %v497_v36 = vadd.f32 %v1959_v32, %v1948_v29  ;;  %v1978_v38 = vld [vmem:[%s3012_s1 + $0xa8] sm:$0xff]  ;;  %v1983_v39 = vld [vmem:[%s3013_s2 + $0xe0] sm:$0xff]  ;;  %v1989_v41 = vld [vmem:[%s3014_s3 + $0xd8] sm:$0xff] }
   0xa   :  { %485 = vadd.xlane.f32.xlu1 %v484_v24  ;;  %v489_v40 = vadd.f32 %v1936_v26, %v488_v30  ;;  %v502_v42 = vadd.f32 %v1978_v38, %v1973_v37  ;;  %v1996_v43 = vld [vmem:[%s3011_s0 + $0xb0] sm:$0xff]  ;;  %v2001_v44 = vld [vmem:[%s3012_s1 + $0xb8] sm:$0xff]  ;;  %v2014_v48 = vld [vmem:[%s3011_s0 + $0x100] sm:$0xff] }
   0xb   :  { %v498_v45 = vadd.f32 %v1964_v33, %v497_v36  ;;  %v2007_v46 = vld [vmem:[%s3013_s2 + $0xf0] sm:$0xff]  ;;  %v507_v47 = vadd.f32 %v2001_v44, %v1996_v43  ;;  %v494_v49 = vadd.f32 %v1954_v31, %v493_v35  ;;  %v2020_v50 = vld [vmem:[%s3014_s3 + $0xe8] sm:$0xff]  ;;  %v2026_v52 = vld [vmem:[%s3014_s3 + $0xf8] sm:$0xff] }
   0xc   :  { %480 = vadd.xlane.f32.xlu0 %v479_v34  ;;  %v503_v51 = vadd.f32 %v1983_v39, %v502_v42  ;;  %v2031_v53 = vld [vmem:[%s3012_s1 + $0x108] sm:$0xff]  ;;  %v2038_v56 = vld [vmem:[%s3013_s2 + $0x140] sm:$0xff]  ;;  %v2045_v58 = vld [vmem:[%s3011_s0 + $0x110] sm:$0xff] }
   0xd   :  { %v499_v54 = vadd.f32 %v1989_v41, %v498_v45  ;;  %v508_v55 = vadd.f32 %v2007_v46, %v507_v47  ;;  %3064 = vst [vmem:[#allocation9_spill] sm:$0xff] %v2038_v56  ;;  %v512_v57 = vadd.f32 %v2031_v53, %v2014_v48  ;;  %v2050_v59 = vld [vmem:[%s3012_s1 + $0x118] sm:$0xff]  ;;  %v2055_v60 = vld [vmem:[%s3013_s2 + $0x150] sm:$0xff]  ;;  %v2062_v62 = vld [vmem:[%s3011_s0 + $0x120] sm:$0xff] }
   0xe   :  { %490 = vadd.xlane.f32.xlu1 %v489_v40  ;;  %3065 = vst [vmem:[#allocation10_spill] sm:$0xff] %v2055_v60  ;;  %v517_v61 = vadd.f32 %v2050_v59, %v2045_v58  ;;  %v2067_v63 = vld [vmem:[%s3012_s1 + $0x128] sm:$0xff]  ;;  %v2072_v3 = vld [vmem:[%s3011_s0 + $0x130] sm:$0xff]  ;;  %v504_v8 = vadd.f32 %v2020_v50, %v503_v51  ;;  %v2084_v15 = vld [vmem:[%s3014_s3 + $0x158] sm:$0xff] }
   0xf   :  { %v2078_v10 = vld [vmem:[%s3014_s3 + $0x148] sm:$0xff]  ;;  %v513_v14 = vadd.f32 %v2038_v56, %v512_v57  ;;  %3067 = vst [vmem:[#allocation12_spill] sm:$0xff] %v2084_v15  ;;  %v522_v19 = vadd.f32 %v2067_v63, %v2062_v62  ;;  %v2091_v21 = vld [vmem:[%s3012_s1 + $0x138] sm:$0xff]  ;;  %v509_v24 = vadd.f32 %v2026_v52, %v508_v55  ;;  %v2098_v28 = vld [vmem:[%s3013_s2 + $0x160] sm:$0xff] }
  0x10   :  { %495 = vadd.xlane.f32.xlu0 %v494_v49  ;;  %3066 = vst [vmem:[#allocation11_spill] sm:$0xff] %v2078_v10  ;;  %v518_v25 = vadd.f32 %v2055_v60, %v517_v61  ;;  %3068 = vst [vmem:[#allocation13_spill] sm:$0xff] %v2098_v28  ;;  %v527_v30 = vadd.f32 %v2091_v21, %v2072_v3  ;;  %v2105_v34 = vld [vmem:[%s3011_s0 + $0x180] sm:$0xff]  ;;  %v2110_v35 = vld [vmem:[%s3012_s1 + $0x188] sm:$0xff] }
  0x11   :  { %v2115_v36 = vld [vmem:[%s3013_s2 + $0x170] sm:$0xff]  ;;  %v2125_v42 = vld [vmem:[%s3012_s1 + $0x198] sm:$0xff]  ;;  %v514_v45 = vadd.f32 %v2078_v10, %v513_v14  ;;  %v2131_v47 = vld [vmem:[%s3014_s3 + $0x168] sm:$0xff]  ;;  %v523_v49 = vadd.f32 %v2098_v28, %v522_v19  ;;  %v532_v55 = vadd.f32 %v2110_v35, %v2105_v34 }
  0x12   :  { %500 = vadd.xlane.f32.xlu1 %v499_v54  ;;  %3069 = vst [vmem:[#allocation14_spill] sm:$0xff] %v2115_v36  ;;  %v2120_v40 = vld [vmem:[%s3011_s0 + $0x190] sm:$0xff]  ;;  %3070 = vst [vmem:[#allocation15_spill] sm:$0xff] %v2131_v47  ;;  %v2137_v51 = vld [vmem:[%s3014_s3 + $0x178] sm:$0xff]  ;;  %v519_v57 = vadd.f32 %v2084_v15, %v518_v25  ;;  %v528_v61 = vadd.f32 %v2115_v36, %v527_v30 }
  0x13   :  { %3071 = vst [vmem:[#allocation16_spill] sm:$0xff] %v2137_v51  ;;  %v2142_v54 = vld [vmem:[%s3013_s2 + $0x1c0] sm:$0xff]  ;;  %v537_v14 = vadd.f32 %v2125_v42, %v2120_v40  ;;  %v2168_v25 = vld [vmem:[%s3011_s0 + $0x1b0] sm:$0xff]  ;;  %v2173_v30 = vld [vmem:[%s3012_s1 + $0x1b8] sm:$0xff] }
  0x14   :  { %505 = vadd.xlane.f32.xlu0 %v504_v8  ;;  %3072 = vst [vmem:[#allocation17_spill] sm:$0xff] %v2142_v54  ;;  %v2151_v8 = vld [vmem:[%s3013_s2 + $0x1d0] sm:$0xff]  ;;  %v2158_v19 = vld [vmem:[%s3011_s0 + $0x1a0] sm:$0xff]  ;;  %3074 = vst [vmem:[#allocation19_spill] sm:$0xff] %v2173_v30 }
  0x15   :  { %3073 = vst [vmem:[#allocation18_spill] sm:$0xff] %v2151_v8 }
  0x16   :  { %510 = vadd.xlane.f32.xlu1 %v509_v24  ;;  %v2163_v24 = vld [vmem:[%s3012_s1 + $0x1a8] sm:$0xff] }
  0x17   :  { %12 = vsyncpa [#allocation7], 0  ;;  %v524_v36 = vadd.f32 %v2131_v47, %v523_v49  ;;  %v533_v28 = vadd.f32 %v2142_v54, %v532_v55  ;;  %v542_v15 = vadd.f32 %v2163_v24, %v2158_v19  ;;  %v529_v60 = vadd.f32 %v2137_v51, %v528_v61  ;;  %v2183_v10 = vld [vmem:[%s3014_s3 + $0x1c8] sm:$0xff]  ;;  %v2196_v55 = vld [vmem:[%s3014_s3 + $0x1d8] sm:$0xff] }
  0x18   :  { %515 = vadd.xlane.f32.xlu0 %v514_v45  ;;  %3075 = vst [vmem:[#allocation20_spill] sm:$0xff] %v2183_v10  ;;  %v538_v56 = vadd.f32 %v2151_v8, %v537_v14  ;;  %v2189_v45 = vld [vmem:[%s3013_s2 + $0x1e0] sm:$0xff]  ;;  %v547_v49 = vadd.f32 %v2173_v30, %v2168_v25  ;;  %3077 = vst [vmem:[#allocation22_spill] sm:$0xff] %v2196_v55  ;;  %v2209_v54 = vld [vmem:[%s3014_s3 + $0x1e8] sm:$0xff] }
  0x19   :  { %3076 = vst [vmem:[#allocation21_spill] sm:$0xff] %v2189_v45  ;;  %v534_v61 = vadd.f32 %v2183_v10, %v533_v28  ;;  %v543_v14 = vadd.f32 %v2189_v45, %v542_v15  ;;  %3079 = vst [vmem:[#allocation24_spill] sm:$0xff] %v2209_v54  ;;  %v2215_v47 = vld [vmem:[%s3014_s3 + $0x1f8] sm:$0xff]  ;;  %v1076_v15 = vld [vmem:[%s3017_s6 + $0x88] sm:$0xff] }
  0x1a   :  { %520 = vadd.xlane.f32.xlu1 %v519_v57  ;;  %v2201_v57 = vld [vmem:[%s3013_s2 + $0x1f0] sm:$0xff]  ;;  %v539_v8 = vadd.f32 %v2196_v55, %v538_v56  ;;  %3080 = vst [vmem:[#allocation25_spill] sm:$0xff] %v2215_v47  ;;  %v1075_v56 = vld [vmem:[%s3017_s6 + $0x80] sm:$0xff] }
  0x1b   :  { %3078 = vst [vmem:[#allocation23_spill] sm:$0xff] %v2201_v57  ;;  %v548_v51 = vadd.f32 %v2201_v57, %v547_v49  ;;  %v544_v28 = vadd.f32 %v2209_v54, %v543_v14  ;;  %v1669_v49 = vpack.c.bf16 %v1076_v15, %v1075_v56  ;;  %v1092_v56 = vld [vmem:[%s3017_s6 + $0x108] sm:$0xff]  ;;  %v1077_v15 = vld [vmem:[%s3017_s6 + $0x90] sm:$0xff]  ;;  %v1078_v57 = vld [vmem:[%s3017_s6 + $0x98] sm:$0xff] }
  0x1c   :  { %525 = vadd.xlane.f32.xlu0 %v524_v36  ;;  %v1107_v36 = vld [vmem:[%s3017_s6 + $0x180] sm:$0xff] }
  0x1d   :  { %1670 = vmatprep.subr.bf16.mxu0 %v1669_v49  ;;  %v1061_v49 = vld [vmem:[%s3017_s6 + $0x10] sm:$0xff] }
  0x1e   :  { %530 = vadd.xlane.f32.xlu1 %v529_v60  ;;  %v549_v60 = vadd.f32 %v2215_v47, %v548_v51  ;;  %v1059_v51 = vld [vmem:[%s3017_s6] sm:$0xff] }
  0x20   :  { %535 = vadd.xlane.f32.xlu0 %v534_v61  ;;  %v1060_v61 = vld [vmem:[%s3017_s6 + $0x8] sm:$0xff] }
  0x22   :  { %540 = vadd.xlane.f32.xlu1 %v539_v8  ;;  %v1108_v8 = vld [vmem:[%s3017_s6 + $0x188] sm:$0xff] }
  0x23   :  { %v1701_v14 = vpack.c.bf16 %v1108_v8, %v1107_v36  ;;  %v1109_v36 = vld [vmem:[%s3017_s6 + $0x190] sm:$0xff]  ;;  %v1110_v8 = vld [vmem:[%s3017_s6 + $0x198] sm:$0xff] }
  0x24   :  { %545 = vadd.xlane.f32.xlu0 %v544_v28  ;;  %v1671_v28 = vpack.c.bf16 %v1060_v61, %v1059_v51  ;;  %v1673_v51 = vpack.c.bf16 %v1078_v57, %v1077_v15  ;;  %v1705_v61 = vpack.c.bf16 %v1110_v8, %v1109_v36  ;;  %v1079_v57 = vld [vmem:[%s3017_s6 + $0xa0] sm:$0xff]  ;;  %v1112_v8 = vld [vmem:[%s3017_s6 + $0x1a8] sm:$0xff] }
  0x25   :  { %1702 = vmatprep.subr.bf16.mxu1 %v1701_v14  ;;  %v1094_v14 = vld [vmem:[%s3017_s6 + $0x118] sm:$0xff] }
  0x26   :  { %550 = vadd.xlane.f32.xlu1 %v549_v60  ;;  %v1091_v60 = vld [vmem:[%s3017_s6 + $0x100] sm:$0xff]  ;;  %1672 = vmatpush3.bf16.msra.mxu0 %v1671_v28  ;;  %v1080_v28 = vld [vmem:[%s3017_s6 + $0xa8] sm:$0xff] }
  0x27   :  { %v1703_v47 = vpack.c.bf16 %v1092_v56, %v1091_v60  ;;  %v1062_v60 = vld [vmem:[%s3017_s6 + $0x18] sm:$0xff]  ;;  %v1093_v56 = vld [vmem:[%s3017_s6 + $0x110] sm:$0xff]  ;;  %1674 = vmatprep.subr.bf16.mxu0 %v1673_v51  ;;  %v1677_v36 = vpack.c.bf16 %v1080_v28, %v1079_v57  ;;  %v1064_v51 = vld [vmem:[%s3017_s6 + $0x28] sm:$0xff] }
  0x28   :  { %v1675_v54 = vpack.c.bf16 %v1062_v60, %v1061_v49  ;;  %v1707_v15 = vpack.c.bf16 %v1094_v14, %v1093_v56  ;;  %v1063_v49 = vld [vmem:[%s3017_s6 + $0x20] sm:$0xff]  ;;  %v1096_v56 = vld [vmem:[%s3017_s6 + $0x128] sm:$0xff] }
  0x29   :  { %1704 = vmatpush3.bf16.msra.mxu1 %v1703_v47  ;;  %v1111_v47 = vld [vmem:[%s3017_s6 + $0x1a0] sm:$0xff]  ;;  %v1679_v14 = vpack.c.bf16 %v1064_v51, %v1063_v49 }
  0x2a   :  { %1706 = vmatprep.subr.bf16.mxu1 %v1705_v61  ;;  %v1709_v60 = vpack.c.bf16 %v1112_v8, %v1111_v47  ;;  %v1095_v61 = vld [vmem:[%s3017_s6 + $0x120] sm:$0xff]  ;;  %1676 = vmatpush3.bf16.msra.mxu0 %v1675_v54 }
  0x2b   :  { %1678 = vmatprep.subr.bf16.mxu0 %v1677_v36  ;;  %v1711_v57 = vpack.c.bf16 %v1096_v56, %v1095_v61 }
  0x2d   :  { %1708 = vmatpush3.bf16.msra.mxu1 %v1707_v15 }
  0x2e   :  { %1710 = vmatprep.subr.bf16.mxu1 %v1709_v60  ;;  %1680 = vmatpush3.bf16.msra.mxu0 %v1679_v14 }
  0x31   :  { %1712 = vmatpush3.bf16.msra.mxu1 %v1711_v57 }
  0x95   :  { %v476_v28 = vpop.xlane.xlu0 %475 }
  0x96   :  { %v553_v47 = vmul.f32 0.001953125, %v476_v28 }
  0x97   :  { %v486_v8 = vpop.xlane.xlu1 %485 }
  0x98   :  { %v555_v45 = vmul.f32 0.001953125, %v486_v8  ;;  %v2292_v55 = vsub.f32 %v1838_v0, %v553_v47  ;;  %v2295_v10 = vsub.f32 %v1843_v1, %v553_v47  ;;  %v2298_v30 = vsub.f32 %v1848_v2, %v553_v47 }
  0x99   :  { %v2301_v54 = vsub.f32 %v1865_v6, %v553_v47  ;;  %v481_v49 = vpop.xlane.xlu0 %480 }
  0x9a   :  { %v2304_v15 = vsub.f32 %v1855_v4, %v555_v45  ;;  %v2307_v36 = vsub.f32 %v1860_v5, %v555_v45  ;;  %v2310_v60 = vsub.f32 %v1870_v7, %v555_v45  ;;  %v2313_v0 = vsub.f32 %v1883_v11, %v555_v45 }
  0x9b   :  { %v554_v1 = vmul.f32 0.001953125, %v481_v49  ;;  %v491_v51 = vpop.xlane.xlu1 %490  ;;  %v633_v2 = vmul.f32 %v2292_v55, %v2292_v55  ;;  %v634_v6 = vmul.f32 %v2295_v10, %v2295_v10  ;;  %v635_v4 = vmul.f32 %v2298_v30, %v2298_v30 }
  0x9c   :  { %3081 = vst [vmem:[#allocation26_spill] sm:$0xff] %v2304_v15  ;;  %3082 = vst [vmem:[#allocation27_spill] sm:$0xff] %v2307_v36  ;;  %v556_v5 = vmul.f32 0.001953125, %v491_v51  ;;  %v636_v61 = vmul.f32 %v2301_v54, %v2301_v54  ;;  %v641_v7 = vmul.f32 %v2304_v15, %v2304_v15  ;;  %v642_v11 = vmul.f32 %v2307_v36, %v2307_v36 }
  0x9d   :  { %3083 = vst [vmem:[#allocation28_spill] sm:$0xff] %v2310_v60  ;;  %3084 = vst [vmem:[#allocation29_spill] sm:$0xff] %v2313_v0  ;;  %v2328_v45 = vsub.f32 %v1877_v9, %v554_v1  ;;  %v2331_v56 = vsub.f32 %v1888_v12, %v554_v1  ;;  %v697_v14 = vadd.f32 %v634_v6, %v633_v2  ;;  %v496_v8 = vpop.xlane.xlu0 %495 }
  0x9e   :  { %v643_v57 = vmul.f32 %v2310_v60, %v2310_v60  ;;  %v2336_v28 = vsub.f32 %v1901_v16, %v556_v5  ;;  %v2339_v47 = vsub.f32 %v1906_v17, %v556_v5  ;;  %v644_v49 = vmul.f32 %v2313_v0, %v2313_v0 }
  0x9f   :  { %v707_v51 = vadd.f32 %v642_v11, %v641_v7  ;;  %v557_v9 = vmul.f32 0.001953125, %v496_v8  ;;  %v501_v15 = vpop.xlane.xlu1 %500  ;;  %v698_v36 = vadd.f32 %v697_v14, %v635_v4  ;;  %v2344_v12 = vsub.f32 %v1893_v13, %v554_v1 }
  0xa0   :  { %v2347_v2 = vsub.f32 %v1917_v20, %v554_v1  ;;  %v558_v6 = vmul.f32 0.001953125, %v501_v15  ;;  %v637_v17 = vmul.f32 %v2328_v45, %v2328_v45  ;;  %v638_v60 = vmul.f32 %v2331_v56, %v2331_v56 }
  0xa1   :  { %v708_v16 = vadd.f32 %v707_v51, %v643_v57  ;;  %v2354_v0 = vsub.f32 %v1924_v22, %v557_v9  ;;  %v2357_v7 = vsub.f32 %v1929_v23, %v557_v9  ;;  %v699_v4 = vadd.f32 %v698_v36, %v636_v61  ;;  %v506_v1 = vpop.xlane.xlu0 %505 }
  0xa2   :  { %v639_v13 = vmul.f32 %v2344_v12, %v2344_v12  ;;  %v2362_v20 = vsub.f32 %v1948_v29, %v558_v6  ;;  %v2365_v15 = vsub.f32 %v1959_v32, %v558_v6  ;;  %v640_v14 = vmul.f32 %v2347_v2, %v2347_v2 }
  0xa3   :  { %v709_v11 = vadd.f32 %v708_v16, %v644_v49  ;;  %v559_v22 = vmul.f32 0.001953125, %v506_v1  ;;  %700 = vadd.xlane.f32.xlu0 %v699_v4  ;;  %v511_v57 = vpop.xlane.xlu1 %510  ;;  %v702_v23 = vadd.f32 %v638_v60, %v637_v17  ;;  %v2370_v36 = vsub.f32 %v1911_v18, %v556_v5 }
  0xa4   :  { %v2373_v61 = vsub.f32 %v1936_v26, %v556_v5  ;;  %v2375_v29 = vmul.f32 0.001953125, %v511_v57  ;;  %v645_v32 = vmul.f32 %v2336_v28, %v2336_v28  ;;  %v646_v8 = vmul.f32 %v2339_v47, %v2339_v47 }
  0xa5   :  { %v2382_v49 = vsub.f32 %v1941_v27, %v557_v9  ;;  %v2385_v51 = vsub.f32 %v1973_v37, %v559_v22  ;;  %v2388_v18 = vsub.f32 %v1978_v38, %v559_v22  ;;  %v703_v60 = vadd.f32 %v702_v23, %v639_v13  ;;  %v516_v27 = vpop.xlane.xlu0 %515 }
  0xa6   :  { %v647_v26 = vmul.f32 %v2370_v36, %v2370_v36  ;;  %v2394_v5 = vsub.f32 %v1996_v43, %v2375_v29  ;;  %v2398_v16 = vsub.f32 %v2001_v44, %v2375_v29  ;;  %v648_v37 = vmul.f32 %v2373_v61, %v2373_v61 }
  0xa7   :  { %3085 = vst [vmem:[#allocation30_spill] sm:$0xff] %v2382_v49  ;;  %v712_v17 = vadd.f32 %v646_v8, %v645_v32  ;;  %v2402_v4 = vmul.f32 0.001953125, %v516_v27  ;;  %710 = vadd.xlane.f32.xlu0 %v709_v11  ;;  %v704_v38 = vadd.f32 %v703_v60, %v640_v14  ;;  %v521_v13 = vpop.xlane.xlu1 %520  ;;  %v2405_v1 = vsub.f32 %v1954_v31, %v557_v9 }
  0xa8   :  { %v649_v43 = vmul.f32 %v2354_v0, %v2354_v0  ;;  %v2409_v57 = vmul.f32 0.001953125, %v521_v13  ;;  %v650_v23 = vmul.f32 %v2357_v7, %v2357_v7  ;;  %v651_v32 = vmul.f32 %v2382_v49, %v2382_v49 }
  0xa9   :  { %v713_v44 = vadd.f32 %v712_v17, %v647_v26  ;;  %v2417_v11 = vsub.f32 %v2014_v48, %v2402_v4  ;;  %v2421_v31 = vsub.f32 %v2031_v53, %v2402_v4  ;;  %705 = vadd.xlane.f32.xlu1 %v704_v38  ;;  %v652_v9 = vmul.f32 %v2405_v1, %v2405_v1  ;;  %v526_v48 = vpop.xlane.xlu0 %525 }
  0xaa   :  { %v2426_v14 = vsub.f32 %v1964_v33, %v558_v6  ;;  %v2430_v8 = vsub.f32 %v2045_v58, %v2409_v57  ;;  %v2434_v60 = vsub.f32 %v2050_v59, %v2409_v57  ;;  %v717_v27 = vadd.f32 %v650_v23, %v649_v43 }
  0xab   :  { %3086 = vst [vmem:[#allocation31_spill] sm:$0xff] %v2417_v11  ;;  %3087 = vst [vmem:[#allocation32_spill] sm:$0xff] %v2421_v31  ;;  %v714_v26 = vadd.f32 %v713_v44, %v648_v37  ;;  %v2436_v53 = vmul.f32 0.001953125, %v526_v48  ;;  %v531_v17 = vpop.xlane.xlu1 %530  ;;  %v2439_v38 = vsub.f32 %v1989_v41, %v558_v6  ;;  %v653_v33 = vmul.f32 %v2362_v20, %v2362_v20 }
  0xac   :  { %3088 = vst [vmem:[#allocation33_spill] sm:$0xff] %v2430_v8  ;;  %3089 = vst [vmem:[#allocation34_spill] sm:$0xff] %v2434_v60  ;;  %v654_v58 = vmul.f32 %v2365_v15, %v2365_v15  ;;  %v718_v13 = vadd.f32 %v717_v27, %v651_v32  ;;  %v2445_v49 = vmul.f32 0.001953125, %v531_v17  ;;  %v655_v59 = vmul.f32 %v2426_v14, %v2426_v14 }
  0xad   :  { %v2450_v37 = vsub.f32 %v1983_v39, %v559_v22  ;;  %v2454_v43 = vsub.f32 %v2062_v62, %v2436_v53  ;;  %v2458_v41 = vsub.f32 %v2067_v63, %v2436_v53  ;;  %715 = vadd.xlane.f32.xlu1 %v714_v26  ;;  %v656_v6 = vmul.f32 %v2439_v38, %v2439_v38  ;;  %v536_v62 = vpop.xlane.xlu0 %535 }
  0xae   :  { %v722_v44 = vadd.f32 %v654_v58, %v653_v33  ;;  %v719_v23 = vadd.f32 %v718_v13, %v652_v9  ;;  %v2464_v32 = vsub.f32 %v2072_v3, %v2445_v49  ;;  %v2468_v39 = vsub.f32 %v2091_v21, %v2445_v49 }
  0xaf   :  { %3090 = vst [vmem:[#allocation35_spill] sm:$0xff] %v2454_v43  ;;  %v2471_v48 = vsub.f32 %v2020_v50, %v559_v22  ;;  %v2473_v63 = vmul.f32 0.001953125, %v536_v62  ;;  %v657_v27 = vmul.f32 %v2385_v51, %v2385_v51  ;;  %v658_v9 = vmul.f32 %v2388_v18, %v2388_v18  ;;  %v541_v17 = vpop.xlane.xlu1 %540 }
  0xb0   :  { %3091 = vst [vmem:[#allocation36_spill] sm:$0xff] %v2464_v32  ;;  %v723_v26 = vadd.f32 %v722_v44, %v655_v59  ;;  %720 = vadd.xlane.f32.xlu0 %v719_v23  ;;  %v659_v3 = vmul.f32 %v2450_v37, %v2450_v37  ;;  %v2483_v33 = vmul.f32 0.001953125, %v541_v17  ;;  %v2487_v50 = vsub.f32 %v2007_v46, %v2375_v29 }
  0xb1   :  { %v660_v21 = vmul.f32 %v2471_v48, %v2471_v48  ;;  %v2491_v22 = vsub.f32 %v2105_v34, %v2473_v63  ;;  %v2495_v58 = vsub.f32 %v2110_v35, %v2473_v63  ;;  %v727_v59 = vadd.f32 %v658_v9, %v657_v27  ;;  %v546_v46 = vpop.xlane.xlu0 %545  ;;  %v3097_v9 = vld [vmem:[#allocation11_spill] sm:$0xff] }
  0xb2   :  { %3092 = vst [vmem:[#allocation37_spill] sm:$0xff] %v2487_v50  ;;  %v724_v13 = vadd.f32 %v723_v26, %v656_v6  ;;  %v2499_v44 = vsub.f32 %v2120_v40, %v2483_v33  ;;  %v2503_v23 = vsub.f32 %v2125_v42, %v2483_v33  ;;  %v2507_v62 = vsub.f32 %v2026_v52, %v2375_v29  ;;  %v3095_v52 = vld [vmem:[#allocation9_spill] sm:$0xff] }
  0xb3   :  { %3093 = vst [vmem:[#allocation38_spill] sm:$0xff] %v2491_v22  ;;  %v661_v34 = vmul.f32 %v2394_v5, %v2394_v5  ;;  %v728_v35 = vadd.f32 %v727_v59, %v659_v3  ;;  %v2511_v6 = vmul.f32 0.001953125, %v546_v46  ;;  %v662_v40 = vmul.f32 %v2398_v16, %v2398_v16  ;;  %v551_v42 = vpop.xlane.xlu1 %550 }
  0xb4   :  { %3094 = vst [vmem:[#allocation39_spill] sm:$0xff] %v2499_v44  ;;  %725 = vadd.xlane.f32.xlu1 %v724_v13  ;;  %v663_v26 = vmul.f32 %v2487_v50, %v2487_v50  ;;  %v664_v27 = vmul.f32 %v2507_v62, %v2507_v62  ;;  %v2521_v29 = vsub.f32 %v3095_v52, %v2402_v4 }
  0xb5   :  { %v2525_v17 = vsub.f32 %v3097_v9, %v2402_v4  ;;  %v665_v3 = vmul.f32 %v2417_v11, %v2417_v11  ;;  %v729_v13 = vadd.f32 %v728_v35, %v660_v21  ;;  %v2531_v59 = vsub.f32 %v2158_v19, %v2511_v6  ;;  %v3100_v19 = vld [vmem:[#allocation10_spill] sm:$0xff] }
  0xb6   :  { %3096 = vst [vmem:[#allocation9_spill] sm:$0xff] %v2521_v29  ;;  %v2535_v46 = vsub.f32 %v2163_v24, %v2511_v6  ;;  %v732_v50 = vadd.f32 %v662_v40, %v661_v34  ;;  %v666_v52 = vmul.f32 %v2421_v31, %v2421_v31  ;;  %v667_v4 = vmul.f32 %v2521_v29, %v2521_v29  ;;  %v3102_v24 = vld [vmem:[#allocation12_spill] sm:$0xff] }
  0xb7   :  { %3098 = vst [vmem:[#allocation11_spill] sm:$0xff] %v2531_v59  ;;  %v668_v9 = vmul.f32 %v2525_v17, %v2525_v17  ;;  %v2543_v11 = vmul.f32 0.001953125, %v551_v42  ;;  %730 = vadd.xlane.f32.xlu0 %v729_v13  ;;  %v2547_v35 = vsub.f32 %v3100_v19, %v2409_v57  ;;  %v2551_v34 = vsub.f32 %v3102_v24, %v2409_v57  ;;  %v3104_v42 = vld [vmem:[#allocation19_spill] sm:$0xff] }
  0xb8   :  { %3099 = vst [vmem:[#allocation40_spill] sm:$0xff] %v2535_v46  ;;  %v733_v21 = vadd.f32 %v732_v50, %v663_v26  ;;  %v669_v40 = vmul.f32 %v2430_v8, %v2430_v8  ;;  %v737_v31 = vadd.f32 %v666_v52, %v665_v3  ;;  %v670_v50 = vmul.f32 %v2434_v60, %v2434_v60  ;;  %v3106_v3 = vld [vmem:[#allocation13_spill] sm:$0xff]  ;;  %v3108_v8 = vld [vmem:[#allocation15_spill] sm:$0xff] }
  0xb9   :  { %3101 = vst [vmem:[#allocation10_spill] sm:$0xff] %v2547_v35  ;;  %v2557_v29 = vsub.f32 %v2168_v25, %v2543_v11  ;;  %v2561_v13 = vsub.f32 %v3104_v42, %v2543_v11  ;;  %v671_v57 = vmul.f32 %v2547_v35, %v2547_v35  ;;  %v672_v19 = vmul.f32 %v2551_v34, %v2551_v34  ;;  %v3109_v35 = vld [vmem:[#allocation14_spill] sm:$0xff] }
  0xba   :  { %v734_v26 = vadd.f32 %v733_v21, %v664_v27  ;;  %v2571_v52 = vsub.f32 %v3106_v3, %v2436_v53  ;;  %v738_v25 = vadd.f32 %v737_v31, %v667_v4  ;;  %v742_v24 = vadd.f32 %v670_v50, %v669_v40  ;;  %v3111_v31 = vld [vmem:[#allocation16_spill] sm:$0xff] }
  0xbb   :  { %3103 = vst [vmem:[#allocation12_spill] sm:$0xff] %v2557_v29  ;;  %3105 = vst [vmem:[#allocation19_spill] sm:$0xff] %v2561_v13  ;;  %v2575_v42 = vsub.f32 %v3108_v8, %v2436_v53  ;;  %v673_v60 = vmul.f32 %v2454_v43, %v2454_v43  ;;  %v674_v27 = vmul.f32 %v2458_v41, %v2458_v41 }
  0xbc   :  { %3107 = vst [vmem:[#allocation13_spill] sm:$0xff] %v2571_v52  ;;  %735 = vadd.xlane.f32.xlu1 %v734_v26  ;;  %v675_v21 = vmul.f32 %v2571_v52, %v2571_v52  ;;  %v2585_v3 = vsub.f32 %v3109_v35, %v2445_v49  ;;  %v2589_v4 = vsub.f32 %v3111_v31, %v2445_v49 }
  0xbd   :  { %v739_v8 = vadd.f32 %v738_v25, %v668_v9  ;;  %v743_v53 = vadd.f32 %v742_v24, %v671_v57  ;;  %v676_v40 = vmul.f32 %v2575_v42, %v2575_v42  ;;  %v677_v50 = vmul.f32 %v2464_v32, %v2464_v32  ;;  %v3112_v9 = vld [vmem:[#allocation17_spill] sm:$0xff]  ;;  %v3114_v25 = vld [vmem:[#allocation20_spill] sm:$0xff]  ;;  %v3115_v32 = vld [vmem:[#allocation18_spill] sm:$0xff] }
  0xbe   :  { %3110 = vst [vmem:[#allocation15_spill] sm:$0xff] %v2585_v3  ;;  %v747_v26 = vadd.f32 %v674_v27, %v673_v60  ;;  %v678_v52 = vmul.f32 %v2468_v39, %v2468_v39  ;;  %v679_v35 = vmul.f32 %v2585_v3, %v2585_v3  ;;  %v680_v43 = vmul.f32 %v2589_v4, %v2589_v4 }
  0xbf   :  { %740 = vadd.xlane.f32.xlu0 %v739_v8  ;;  %v744_v49 = vadd.f32 %v743_v53, %v672_v19  ;;  %v2603_v57 = vsub.f32 %v3112_v9, %v2473_v63  ;;  %v2607_v24 = vsub.f32 %v3114_v25, %v2473_v63  ;;  %v681_v60 = vmul.f32 %v2491_v22, %v2491_v22  ;;  %v3117_v53 = vld [vmem:[#allocation22_spill] sm:$0xff] }
  0xc0   :  { %v748_v27 = vadd.f32 %v747_v26, %v675_v21  ;;  %v752_v31 = vadd.f32 %v678_v52, %v677_v50  ;;  %v682_v3 = vmul.f32 %v2495_v58, %v2495_v58  ;;  %v2615_v8 = vsub.f32 %v3115_v32, %v2483_v33 }
  0xc1   :  { %3113 = vst [vmem:[#allocation14_spill] sm:$0xff] %v2603_v57  ;;  %745 = vadd.xlane.f32.xlu1 %v744_v49  ;;  %v683_v19 = vmul.f32 %v2603_v57, %v2603_v57  ;;  %v684_v63 = vmul.f32 %v2607_v24, %v2607_v24  ;;  %v2623_v9 = vsub.f32 %v3117_v53, %v2483_v33  ;;  %v3119_v57 = vld [vmem:[#allocation21_spill] sm:$0xff]  ;;  %v3121_v33 = vld [vmem:[#allocation24_spill] sm:$0xff] }
  0xc2   :  { %3116 = vst [vmem:[#allocation16_spill] sm:$0xff] %v2615_v8  ;;  %v685_v52 = vmul.f32 %v2499_v44, %v2499_v44  ;;  %v749_v21 = vadd.f32 %v748_v27, %v676_v40  ;;  %v753_v50 = vadd.f32 %v752_v31, %v679_v35  ;;  %v757_v26 = vadd.f32 %v682_v3, %v681_v60  ;;  %v1081_v3 = vld [vmem:[%s3017_s6 + $0xb0] sm:$0xff]  ;;  %v1114_v31 = vld [vmem:[%s3017_s6 + $0x1b8] sm:$0xff]  ;;  %v1083_v44 = vld [vmem:[%s3017_s6 + $0xc0] sm:$0xff] }
  0xc3   :  { %3118 = vst [vmem:[#allocation17_spill] sm:$0xff] %v2623_v9  ;;  %v686_v32 = vmul.f32 %v2503_v23, %v2503_v23  ;;  %v687_v49 = vmul.f32 %v2615_v8, %v2615_v8  ;;  %v688_v25 = vmul.f32 %v2623_v9, %v2623_v9  ;;  %v2635_v22 = vsub.f32 %v3119_v57, %v2511_v6  ;;  %v1082_v57 = vld [vmem:[%s3017_s6 + $0xb8] sm:$0xff] }
  0xc4   :  { %v2639_v53 = vsub.f32 %v3121_v33, %v2511_v6  ;;  %750 = vadd.xlane.f32.xlu0 %v749_v21  ;;  %v754_v40 = vadd.f32 %v753_v50, %v680_v43  ;;  %v758_v35 = vadd.f32 %v757_v26, %v683_v19  ;;  %v689_v27 = vmul.f32 %v2531_v59, %v2531_v59  ;;  %v1113_v6 = vld [vmem:[%s3017_s6 + $0x1b0] sm:$0xff]  ;;  %v1098_v8 = vld [vmem:[%s3017_s6 + $0x138] sm:$0xff] }
  0xc5   :  { %3120 = vst [vmem:[#allocation20_spill] sm:$0xff] %v2635_v22  ;;  %v762_v60 = vadd.f32 %v686_v32, %v685_v52  ;;  %v690_v43 = vmul.f32 %v2535_v46, %v2535_v46  ;;  %v691_v19 = vmul.f32 %v2635_v22, %v2635_v22  ;;  %v3123_v21 = vld [vmem:[#allocation23_spill] sm:$0xff]  ;;  %v1066_v32 = vld [vmem:[%s3017_s6 + $0x38] sm:$0xff] }
  0xc6   :  { %3122 = vst [vmem:[#allocation18_spill] sm:$0xff] %v2639_v53  ;;  %v692_v52 = vmul.f32 %v2639_v53, %v2639_v53  ;;  %v2663_v50 = vsub.f32 %v3123_v21, %v2543_v11  ;;  %v1065_v26 = vld [vmem:[%s3017_s6 + $0x30] sm:$0xff]  ;;  %755 = vadd.xlane.f32.xlu1 %v754_v40  ;;  %v759_v22 = vadd.f32 %v758_v35, %v684_v63  ;;  %v3125_v53 = vld [vmem:[#allocation25_spill] sm:$0xff]  ;;  %v1084_v63 = vld [vmem:[%s3017_s6 + $0xc8] sm:$0xff] }
  0xc7   :  { %v1097_v33 = vld [vmem:[%s3017_s6 + $0x130] sm:$0xff]  ;;  %v763_v59 = vadd.f32 %v762_v60, %v687_v49  ;;  %v2676_v46 = vsub.f32 %v3125_v53, %v2543_v11  ;;  %v693_v21 = vmul.f32 %v2557_v29, %v2557_v29  ;;  %v767_v49 = vadd.f32 %v690_v43, %v689_v27  ;;  %v1115_v35 = vld [vmem:[%s3017_s6 + $0x1c0] sm:$0xff]  ;;  %v1116_v60 = vld [vmem:[%s3017_s6 + $0x1c8] sm:$0xff] }
  0xc8   :  { %3124 = vst [vmem:[#allocation22_spill] sm:$0xff] %v2663_v50  ;;  %v694_v11 = vmul.f32 %v2561_v13, %v2561_v13  ;;  %v695_v53 = vmul.f32 %v2663_v50, %v2663_v50  ;;  %v1681_v40 = vpack.c.bf16 %v1082_v57, %v1081_v3  ;;  %760 = vadd.xlane.f32.xlu0 %v759_v22  ;;  %v1067_v50 = vld [vmem:[%s3017_s6 + $0x40] sm:$0xff]  ;;  %v1068_v3 = vld [vmem:[%s3017_s6 + $0x48] sm:$0xff] }
  0xc9   :  { %v764_v29 = vadd.f32 %v763_v59, %v688_v25  ;;  %v696_v27 = vmul.f32 %v2676_v46, %v2676_v46  ;;  %v1713_v43 = vpack.c.bf16 %v1114_v31, %v1113_v6  ;;  %v1683_v9 = vpack.c.bf16 %v1066_v32, %v1065_v26  ;;  %v1099_v57 = vld [vmem:[%s3017_s6 + $0x140] sm:$0xff]  ;;  %v1100_v6 = vld [vmem:[%s3017_s6 + $0x148] sm:$0xff]  ;;  %v1085_v31 = vld [vmem:[%s3017_s6 + $0xd0] sm:$0xff] }
  0xca   :  { %v768_v13 = vadd.f32 %v767_v49, %v691_v19  ;;  %v772_v22 = vadd.f32 %v694_v11, %v693_v21  ;;  %1682 = vmatprep.subr.bf16.mxu0 %v1681_v40  ;;  %v1715_v59 = vpack.c.bf16 %v1098_v8, %v1097_v33  ;;  %v1685_v25 = vpack.c.bf16 %v1084_v63, %v1083_v44  ;;  %v1086_v26 = vld [vmem:[%s3017_s6 + $0xd8] sm:$0xff]  ;;  %v1117_v8 = vld [vmem:[%s3017_s6 + $0x1d0] sm:$0xff]  ;;  %v1088_v40 = vld [vmem:[%s3017_s6 + $0xe8] sm:$0xff] }
  0xcb   :  { %765 = vadd.xlane.f32.xlu1 %v764_v29  ;;  %1714 = vmatprep.subr.bf16.mxu1 %v1713_v43  ;;  %v1717_v32 = vpack.c.bf16 %v1116_v60, %v1115_v35  ;;  %v1118_v44 = vld [vmem:[%s3017_s6 + $0x1d8] sm:$0xff]  ;;  %v1687_v21 = vpack.c.bf16 %v1068_v3, %v1067_v50  ;;  %v1719_v63 = vpack.c.bf16 %v1100_v6, %v1099_v57  ;;  %v1069_v29 = vld [vmem:[%s3017_s6 + $0x50] sm:$0xff]  ;;  %v1119_v35 = vld [vmem:[%s3017_s6 + $0x1e0] sm:$0xff] }
  0xcc   :  { %v769_v19 = vadd.f32 %v768_v13, %v692_v52  ;;  %v773_v33 = vadd.f32 %v772_v22, %v695_v53  ;;  %1684 = vmatpush3.bf16.msra.mxu0 %v1683_v9  ;;  %1716 = vmatpush3.bf16.msra.mxu1 %v1715_v59  ;;  %v1689_v49 = vpack.c.bf16 %v1086_v26, %v1085_v31  ;;  %v1070_v11 = vld [vmem:[%s3017_s6 + $0x58] sm:$0xff]  ;;  %v1101_v13 = vld [vmem:[%s3017_s6 + $0x150] sm:$0xff]  ;;  %v1087_v53 = vld [vmem:[%s3017_s6 + $0xe0] sm:$0xff] }
  0xcd   :  { %1686 = vmatprep.subr.bf16.mxu0 %v1685_v25  ;;  %1718 = vmatprep.subr.bf16.mxu1 %v1717_v32  ;;  %v1721_v52 = vpack.c.bf16 %v1118_v44, %v1117_v8  ;;  %v1102_v50 = vld [vmem:[%s3017_s6 + $0x158] sm:$0xff]  ;;  %v1120_v60 = vld [vmem:[%s3017_s6 + $0x1e8] sm:$0xff]  ;;  %v1693_v3 = vpack.c.bf16 %v1088_v40, %v1087_v53  ;;  %v1071_v57 = vld [vmem:[%s3017_s6 + $0x60] sm:$0xff]  ;;  %v890_v53 = vlaneseq }
  0xce   :  { %770 = vadd.xlane.f32.xlu0 %v769_v19  ;;  %v774_v9 = vadd.f32 %v773_v33, %v696_v27  ;;  %v1691_v27 = vpack.c.bf16 %v1070_v11, %v1069_v29  ;;  %v1723_v43 = vpack.c.bf16 %v1102_v50, %v1101_v13  ;;  %v1072_v22 = vld [vmem:[%s3017_s6 + $0x68] sm:$0xff]  ;;  %v1103_v59 = vld [vmem:[%s3017_s6 + $0x160] sm:$0xff]  ;;  %v1725_v25 = vpack.c.bf16 %v1120_v60, %v1119_v35  ;;  %v1089_v31 = vld [vmem:[%s3017_s6 + $0xf0] sm:$0xff] }
  0xcf   :  { %v1104_v6 = vld [vmem:[%s3017_s6 + $0x168] sm:$0xff]  ;;  %v1090_v26 = vld [vmem:[%s3017_s6 + $0xf8] sm:$0xff]  ;;  %v1121_v32 = vld [vmem:[%s3017_s6 + $0x1f0] sm:$0xff]  ;;  %v1695_v44 = vpack.c.bf16 %v1072_v22, %v1071_v57 }
  0xd0   :  { %775 = vadd.xlane.f32.xlu1 %v774_v9  ;;  %1688 = vmatpush3.bf16.msra.mxu0 %v1687_v21  ;;  %v1122_v8 = vld [vmem:[%s3017_s6 + $0x1f8] sm:$0xff]  ;;  %v1727_v19 = vpack.c.bf16 %v1104_v6, %v1103_v59  ;;  %v1697_v33 = vpack.c.bf16 %v1090_v26, %v1089_v31  ;;  %v1073_v21 = vld [vmem:[%s3017_s6 + $0x70] sm:$0xff]  ;;  %v470_v6 = vld [vmem:[%s3015_s4] sm:$0xf]  ;;  %s1792_s4 = smov [#allocation6]  }
  0xd1   :  { %1720 = vmatpush3.bf16.msra.mxu1 %v1719_v63  ;;  %1690 = vmatprep.subr.bf16.mxu0 %v1689_v49  ;;  %v1074_v63 = vld [vmem:[%s3017_s6 + $0x78] sm:$0xff]  ;;  %v1729_v49 = vpack.c.bf16 %v1122_v8, %v1121_v32  ;;  %v1105_v29 = vld [vmem:[%s3017_s6 + $0x170] sm:$0xff]  ;;  %v471_v8 = vld [vmem:[%s3016_s5] sm:$0xf]  ;;  %s1434_s5 = sshll.u32 %s1792_s4, 4  ;;  %s1435_s5 = int_to_ptr.vmem [resolvable:$true] %s1434_s5 }
  0xd2   :  { %1722 = vmatprep.subr.bf16.mxu1 %v1721_v52  ;;  %v1106_v11 = vld [vmem:[%s3017_s6 + $0x178] sm:$0xff]  ;;  %v1699_v13 = vpack.c.bf16 %v1074_v63, %v1073_v21  ;;  %s1768_s8 = scalar_lea.vmem %s1435_s5, 2048  ;;  %p1773_p1 = scmp.lt.s32.totalorder %s1435_s5, %s1435_s5 }
  0xd3   :  { %v1731_v9 = vpack.c.bf16 %v1106_v11, %v1105_v29  ;;  %p1769_p0 = scmp.ne.s32.totalorder %s1435_s5, %s1768_s8  ;;  %p1774_p2 = scmp.lt.s32.totalorder %s1768_s8, %s1768_s8 }
  0xd4   :  { %1692 = vmatpush3.bf16.msra.mxu0 %v1691_v27  ;;  %v891_v27 = vshrl.u32 %v890_v53, 7 }
  0xd5   :  { %1724 = vmatpush3.bf16.msra.mxu1 %v1723_v43  ;;  %1694 = vmatprep.subr.bf16.mxu0 %v1693_v3  ;;  %p1775_p3 = por %p1774_p2, %p1773_p1 }
  0xd6   :  { %1726 = vmatprep.subr.bf16.mxu1 %v1725_v25  ;;  %v896_v59 = vsub.s32 1, %v891_v27  ;;  %v904_v31 = vsub.s32 3, %v891_v27  ;;  %v892_v26 = vsub.s32 0, %v891_v27 }
  0xd7   :  { %p1776_p4 = pnand %p1775_p3, %p1769_p0 }
  0xd8   :  { %1696 = vmatpush3.bf16.msra.mxu0 %v1695_v44  ;;  %v900_v44 = vsub.s32 2, %v891_v27  ;;  %v2791_v21 = vrot.slane %v470_v6, %v896_v59  ;;  %v2795_v29 = vrot.slane %v470_v6, %v904_v31  ;;  %v2797_v11 = vrot.slane %v470_v6, %v892_v26 }
  0xd9   :  { %1728 = vmatpush3.bf16.msra.mxu1 %v1727_v19  ;;  %1698 = vmatprep.subr.bf16.mxu0 %v1697_v33 }
  0xda   :  { %1730 = vmatprep.subr.bf16.mxu1 %v1729_v49  ;;  %v2793_v49 = vrot.slane %v471_v8, %v896_v59 }
  0xdc   :  { %1700 = vmatpush3.bf16.msra.mxu0 %v1699_v13 }
  0xdd   :  { %1732 = vmatpush3.bf16.msra.mxu1 %v1731_v9  ;;  %v2799_v9 = vrot.slane %v471_v8, %v904_v31 }
 0x130   :  { %v701_v52 = vpop.xlane.xlu0 %700 }
 0x131   :  { %v777_v50 = vmul.f32 0.001953125, %v701_v52  ;;  %v2801_v52 = vrot.slane %v471_v8, %v892_v26 }
 0x133   :  { %v793_v40 = vadd.f32 1e-05, %v777_v50  ;;  %v2803_v50 = vrot.slane %v470_v6, %v900_v44 }
 0x134   :  { %v711_v35 = vpop.xlane.xlu0 %710 }
 0x135   :  { %1736 = vrsqrt.f32 %v793_v40  ;;  %v779_v60 = vmul.f32 0.001953125, %v711_v35 }
 0x136   :  { %v706_v43 = vpop.xlane.xlu1 %705 }
 0x137   :  { %v778_v3 = vmul.f32 0.001953125, %v706_v43  ;;  %v795_v57 = vadd.f32 1e-05, %v779_v60 }
 0x139   :  { %v794_v22 = vadd.f32 1e-05, %v778_v3  ;;  %1738 = vrsqrt.f32 %v795_v57  ;;  %v2809_v57 = vrot.slane %v471_v8, %v900_v44 }
 0x13a   :  { %v716_v25 = vpop.xlane.xlu1 %715 }
 0x13b   :  { %1740 = vrsqrt.f32 %v794_v22  ;;  %v780_v32 = vmul.f32 0.001953125, %v716_v25 }
 0x13d   :  { %v796_v19 = vadd.f32 1e-05, %v780_v32  ;;  %v721_v33 = vpop.xlane.xlu0 %720  ;;  %v3126_v32 = vld [vmem:[#allocation27_spill] sm:$0xff] }
 0x13e   :  { %v781_v63 = vmul.f32 0.001953125, %v721_v33 }
 0x13f   :  { %v1737_v13 = vpop.eup %1736  ;;  %1742 = vrsqrt.f32 %v796_v19 }
 0x140   :  { %v797_v53 = vadd.f32 1e-05, %v781_v63  ;;  %v826_v35 = vmul.f32 %v1737_v13, %v2295_v10  ;;  %v828_v60 = vmul.f32 %v1737_v13, %v2301_v54  ;;  %v825_v27 = vmul.f32 %v1737_v13, %v2292_v55  ;;  %v3127_v63 = vld [vmem:[#allocation29_spill] sm:$0xff] }
 0x141   :  { %v726_v40 = vpop.xlane.xlu1 %725  ;;  %v827_v3 = vmul.f32 %v1737_v13, %v2298_v30 }
 0x142   :  { %v782_v43 = vmul.f32 0.001953125, %v726_v40  ;;  %1744 = vrsqrt.f32 %v797_v53  ;;  %v911_v22 = vmul.f32 %v2791_v21, %v826_v35  ;;  %v913_v59 = vmul.f32 %v2795_v29, %v828_v60 }
 0x143   :  { %v910_v25 = vmul.f32 %v2797_v11, %v825_v27  ;;  %v1739_v6 = vpop.eup %1738  ;;  %v912_v10 = vmul.f32 %v2803_v50, %v827_v3 }
 0x144   :  { %v798_v31 = vadd.f32 1e-05, %v782_v43  ;;  %v731_v26 = vpop.xlane.xlu0 %730  ;;  %v996_v54 = vadd.f32 %v2793_v49, %v911_v22  ;;  %v998_v55 = vadd.f32 %v2799_v9, %v913_v59  ;;  %v834_v8 = vmul.f32 %v1739_v6, %v3126_v32 }
 0x145   :  { %v995_v30 = vadd.f32 %v2801_v52, %v910_v25  ;;  %v1741_v44 = vpop.eup %1740  ;;  %v783_v19 = vmul.f32 0.001953125, %v731_v26  ;;  %v997_v33 = vadd.f32 %v2809_v57, %v912_v10  ;;  %v836_v13 = vmul.f32 %v1739_v6, %v3127_v63  ;;  %v3129_v63 = vld [vmem:[#allocation28_spill] sm:$0xff] }
 0x146   :  { %1746 = vrsqrt.f32 %v798_v31  ;;  %1187 = vmatprep.mubr.f32.mxu0 %v996_v54  ;;  %1332 = vmatprep.mubr.f32.mxu1 %v998_v55  ;;  %v830_v53 = vmul.f32 %v1741_v44, %v2331_v56  ;;  %v832_v40 = vmul.f32 %v1741_v44, %v2347_v2  ;;  %v829_v35 = vmul.f32 %v1741_v44, %v2328_v45  ;;  %v3128_v31 = vld [vmem:[#allocation26_spill] sm:$0xff] }
 0x147   :  { %v799_v60 = vadd.f32 1e-05, %v783_v19  ;;  %1188 = vmatmul.mubr.f32.vlgmr.msra.gmra.mrb[0].mxu0 %v995_v30  ;;  %1333 = vmatmul.mubr.f32.vlgmr.msra.gmra.mrb[0].mxu1 %v997_v33  ;;  %v831_v27 = vmul.f32 %v1741_v44, %v2344_v12  ;;  %v919_v43 = vmul.f32 %v2791_v21, %v834_v8  ;;  %v921_v3 = vmul.f32 %v2795_v29, %v836_v13 }
 0x148   :  { %v915_v59 = vmul.f32 %v2791_v21, %v830_v53  ;;  %v917_v25 = vmul.f32 %v2795_v29, %v832_v40  ;;  %v914_v56 = vmul.f32 %v2797_v11, %v829_v35  ;;  %v833_v2 = vmul.f32 %v1739_v6, %v3128_v31 }
 0x149   :  { %v736_v22 = vpop.xlane.xlu1 %735  ;;  %v1743_v10 = vpop.eup %1742  ;;  %1748 = vrsqrt.f32 %v799_v60  ;;  %v916_v26 = vmul.f32 %v2803_v50, %v831_v27  ;;  %v1004_v12 = vadd.f32 %v2793_v49, %v919_v43  ;;  %v1006_v32 = vadd.f32 %v2799_v9, %v921_v3 }
 0x14a   :  { %v784_v45 = vmul.f32 0.001953125, %v736_v22  ;;  %v1000_v54 = vadd.f32 %v2793_v49, %v915_v59  ;;  %v1002_v55 = vadd.f32 %v2799_v9, %v917_v25  ;;  %v999_v30 = vadd.f32 %v2801_v52, %v914_v56 }
 0x14b   :  { %v1001_v19 = vadd.f32 %v2809_v57, %v916_v26  ;;  %v918_v33 = vmul.f32 %v2797_v11, %v833_v2  ;;  %v835_v13 = vmul.f32 %v1739_v6, %v3129_v63  ;;  %v838_v35 = vmul.f32 %v1743_v10, %v2339_v47 }
 0x14c   :  { %v800_v8 = vadd.f32 1e-05, %v784_v45  ;;  %v741_v44 = vpop.xlane.xlu0 %740  ;;  %v1745_v53 = vpop.eup %1744  ;;  %1192 = vmatprep.mubr.f32.mxu0 %v1000_v54  ;;  %1337 = vmatprep.mubr.f32.mxu1 %v1002_v55  ;;  %v840_v60 = vmul.f32 %v1743_v10, %v2373_v61  ;;  %v837_v27 = vmul.f32 %v1743_v10, %v2336_v28  ;;  %v839_v59 = vmul.f32 %v1743_v10, %v2370_v36 }
 0x14d   :  { %v785_v40 = vmul.f32 0.001953125, %v741_v44  ;;  %1193 = vmatmul.mubr.f32.gmra.mrb[2].mxu0 %v999_v30  ;;  %1338 = vmatmul.mubr.f32.gmra.mrb[2].mxu1 %v1001_v19  ;;  %v1003_v3 = vadd.f32 %v2801_v52, %v918_v33  ;;  %v920_v22 = vmul.f32 %v2803_v50, %v835_v13  ;;  %v923_v56 = vmul.f32 %v2791_v21, %v838_v35 }
 0x14e   :  { %v746_v43 = vpop.xlane.xlu1 %745  ;;  %1197 = vmatprep.mubr.f32.mxu0 %v1004_v12  ;;  %1342 = vmatprep.mubr.f32.mxu1 %v1006_v32  ;;  %v925_v47 = vmul.f32 %v2795_v29, %v840_v60  ;;  %v922_v28 = vmul.f32 %v2797_v11, %v837_v27  ;;  %v924_v31 = vmul.f32 %v2803_v50, %v839_v59  ;;  %1750 = vrsqrt.f32 %v800_v8  ;;  %v3130_v8 = vld [vmem:[#allocation30_spill] sm:$0xff] }
 0x14f   :  { %v801_v6 = vadd.f32 1e-05, %v785_v40  ;;  %v786_v25 = vmul.f32 0.001953125, %v746_v43  ;;  %v1005_v61 = vadd.f32 %v2809_v57, %v920_v22  ;;  %v842_v2 = vmul.f32 %v1745_v53, %v2357_v7 }
 0x150   :  { %v1747_v45 = vpop.eup %1746  ;;  %v1008_v36 = vadd.f32 %v2793_v49, %v923_v56  ;;  %v1010_v10 = vadd.f32 %v2799_v9, %v925_v47  ;;  %v844_v32 = vmul.f32 %v1745_v53, %v2405_v1  ;;  %v841_v7 = vmul.f32 %v1745_v53, %v2354_v0 }
 0x151   :  { %v751_v26 = vpop.xlane.xlu0 %750  ;;  %1752 = vrsqrt.f32 %v801_v6  ;;  %1198 = vmatmul.mubr.f32.gmra.mrb[4].mxu0 %v1003_v3  ;;  %1343 = vmatmul.mubr.f32.gmra.mrb[4].mxu1 %v1005_v61  ;;  %v927_v54 = vmul.f32 %v2791_v21, %v842_v2  ;;  %v802_v55 = vadd.f32 1e-05, %v786_v25  ;;  %v843_v44 = vmul.f32 %v1745_v53, %v3130_v8 }
 0x152   :  { %v787_v12 = vmul.f32 0.001953125, %v751_v26  ;;  %1202 = vmatprep.mubr.f32.mxu0 %v1008_v36  ;;  %1347 = vmatprep.mubr.f32.mxu1 %v1010_v10  ;;  %v1007_v33 = vadd.f32 %v2801_v52, %v922_v28  ;;  %v1009_v63 = vadd.f32 %v2809_v57, %v924_v31  ;;  %v846_v40 = vmul.f32 %v1747_v45, %v2365_v15 }
 0x153   :  { %v756_v30 = vpop.xlane.xlu1 %755  ;;  %v1749_v19 = vpop.eup %1748  ;;  %v1012_v13 = vadd.f32 %v2793_v49, %v927_v54  ;;  %v929_v60 = vmul.f32 %v2795_v29, %v844_v32  ;;  %v926_v27 = vmul.f32 %v2797_v11, %v841_v7  ;;  %v928_v1 = vmul.f32 %v2803_v50, %v843_v44 }
 0x154   :  { %v848_v0 = vmul.f32 %v1747_v45, %v2439_v38  ;;  %v803_v43 = vadd.f32 1e-05, %v787_v12  ;;  %v788_v53 = vmul.f32 0.001953125, %v756_v30  ;;  %v931_v3 = vmul.f32 %v2791_v21, %v846_v40 }
 0x155   :  { %v761_v35 = vpop.xlane.xlu0 %760  ;;  %1203 = vmatmul.mubr.f32.gmra.mrb[6].mxu0 %v1007_v33  ;;  %1348 = vmatmul.mubr.f32.gmra.mrb[6].mxu1 %v1009_v63  ;;  %v1014_v59 = vadd.f32 %v2799_v9, %v929_v60  ;;  %1754 = vrsqrt.f32 %v802_v55  ;;  %v1011_v6 = vadd.f32 %v2801_v52, %v926_v27  ;;  %v1013_v25 = vadd.f32 %v2809_v57, %v928_v1  ;;  %v3131_v60 = vld [vmem:[#allocation37_spill] sm:$0xff] }
 0x156   :  { %v789_v22 = vmul.f32 0.001953125, %v761_v35  ;;  %1207 = vmatprep.mubr.f32.mxu0 %v1012_v13  ;;  %v933_v15 = vmul.f32 %v2795_v29, %v848_v0  ;;  %v1016_v56 = vadd.f32 %v2793_v49, %v931_v3  ;;  %v845_v61 = vmul.f32 %v1747_v45, %v2362_v20  ;;  %v3132_v3 = vld [vmem:[#allocation32_spill] sm:$0xff] }
 0x157   :  { %1352 = vmatprep.mubr.f32.mxu1 %v1014_v59  ;;  %v847_v28 = vmul.f32 %v1747_v45, %v2426_v14  ;;  %v850_v31 = vmul.f32 %v1749_v19, %v2388_v18  ;;  %1756 = vrsqrt.f32 %v803_v43  ;;  %v804_v2 = vadd.f32 1e-05, %v788_v53 }
 0x158   :  { %v766_v38 = vpop.xlane.xlu1 %765  ;;  %v1018_v47 = vadd.f32 %v2799_v9, %v933_v15  ;;  %v852_v26 = vmul.f32 %v1749_v19, %v2471_v48  ;;  %v849_v36 = vmul.f32 %v1749_v19, %v2385_v51  ;;  %v1751_v10 = vpop.eup %1750  ;;  %v805_v12 = vadd.f32 1e-05, %v789_v22 }
 0x159   :  { %1208 = vmatmul.mubr.f32.gmra.mrb[8].mxu0 %v1011_v6  ;;  %1353 = vmatmul.mubr.f32.gmra.mrb[8].mxu1 %v1013_v25  ;;  %v930_v54 = vmul.f32 %v2797_v11, %v845_v61  ;;  %v932_v20 = vmul.f32 %v2803_v50, %v847_v28  ;;  %v935_v14 = vmul.f32 %v2791_v21, %v850_v31  ;;  %v790_v18 = vmul.f32 0.001953125, %v766_v38  ;;  %v3133_v6 = vld [vmem:[#allocation31_spill] sm:$0xff] }
 0x15a   :  { %1212 = vmatprep.mubr.f32.mxu0 %v1016_v56  ;;  %1357 = vmatprep.mubr.f32.mxu1 %v1018_v47  ;;  %v937_v30 = vmul.f32 %v2795_v29, %v852_v26  ;;  %v934_v32 = vmul.f32 %v2797_v11, %v849_v36  ;;  %v851_v48 = vmul.f32 %v1749_v19, %v2450_v37  ;;  %1758 = vrsqrt.f32 %v804_v2  ;;  %v3134_v36 = vld [vmem:[#allocation9_spill] sm:$0xff] }
 0x15b   :  { %v1753_v45 = vpop.eup %1752  ;;  %v771_v55 = vpop.xlane.xlu0 %770  ;;  %v1015_v51 = vadd.f32 %v2801_v52, %v930_v54  ;;  %v1017_v7 = vadd.f32 %v2809_v57, %v932_v20  ;;  %v1020_v8 = vadd.f32 %v2793_v49, %v935_v14  ;;  %1760 = vrsqrt.f32 %v805_v12  ;;  %v3135_v12 = vld [vmem:[#allocation34_spill] sm:$0xff] }
 0x15c   :  { %v1022_v44 = vadd.f32 %v2799_v9, %v937_v30  ;;  %v936_v33 = vmul.f32 %v2803_v50, %v851_v48  ;;  %v791_v63 = vmul.f32 0.001953125, %v771_v55  ;;  %v854_v13 = vmul.f32 %v1751_v10, %v2398_v16  ;;  %v3136_v55 = vld [vmem:[#allocation33_spill] sm:$0xff] }
 0x15d   :  { %1213 = vmatmul.mubr.f32.gmra.mrb[10].mxu0 %v1015_v51  ;;  %1358 = vmatmul.mubr.f32.gmra.mrb[10].mxu1 %v1017_v7  ;;  %v856_v40 = vmul.f32 %v1751_v10, %v2507_v62  ;;  %v806_v37 = vadd.f32 1e-05, %v790_v18  ;;  %v1019_v19 = vadd.f32 %v2801_v52, %v934_v32  ;;  %v853_v35 = vmul.f32 %v1751_v10, %v2394_v5  ;;  %v776_v1 = vpop.xlane.xlu1 %775  ;;  %v3137_v51 = vld [vmem:[#allocation10_spill] sm:$0xff] }
 0x15e   :  { %1217 = vmatprep.mubr.f32.mxu0 %v1020_v8  ;;  %1362 = vmatprep.mubr.f32.mxu1 %v1022_v44  ;;  %v855_v27 = vmul.f32 %v1751_v10, %v3131_v60  ;;  %v1021_v0 = vadd.f32 %v2809_v57, %v936_v33  ;;  %v939_v43 = vmul.f32 %v2791_v21, %v854_v13  ;;  %v807_v25 = vadd.f32 1e-05, %v791_v63 }
 0x15f   :  { %v941_v53 = vmul.f32 %v2795_v29, %v856_v40  ;;  %v858_v16 = vmul.f32 %v1753_v45, %v3132_v3  ;;  %v1755_v22 = vpop.eup %1754  ;;  %v938_v62 = vmul.f32 %v2797_v11, %v853_v35  ;;  %v860_v15 = vmul.f32 %v1753_v45, %v2525_v17 }
 0x160   :  { %v940_v59 = vmul.f32 %v2803_v50, %v855_v27  ;;  %v857_v5 = vmul.f32 %v1753_v45, %v3133_v6  ;;  %v1024_v56 = vadd.f32 %v2793_v49, %v939_v43  ;;  %v792_v28 = vmul.f32 0.001953125, %v776_v1  ;;  %v3138_v1 = vld [vmem:[#allocation35_spill] sm:$0xff]  ;;  %v3140_v6 = vld [vmem:[#allocation36_spill] sm:$0xff] }
 0x161   :  { %1218 = vmatmul.mubr.f32.gmra.mrb[12].mxu0 %v1019_v19  ;;  %1363 = vmatmul.mubr.f32.gmra.mrb[12].mxu1 %v1021_v0  ;;  %v1026_v38 = vadd.f32 %v2799_v9, %v941_v53  ;;  %v943_v47 = vmul.f32 %v2791_v21, %v858_v16  ;;  %v1757_v61 = vpop.eup %1756  ;;  %v1023_v31 = vadd.f32 %v2801_v52, %v938_v62  ;;  %1762 = vrsqrt.f32 %v806_v37  ;;  %v3139_v53 = vld [vmem:[#allocation13_spill] sm:$0xff] }
 0x162   :  { %v1025_v2 = vadd.f32 %v2809_v57, %v940_v59  ;;  %v945_v26 = vmul.f32 %v2795_v29, %v860_v15  ;;  %1222 = vmatprep.mubr.f32.mxu0 %v1024_v56  ;;  %v942_v17 = vmul.f32 %v2797_v11, %v857_v5  ;;  %v859_v10 = vmul.f32 %v1753_v45, %v3134_v36 }
 0x163   :  { %1367 = vmatprep.mubr.f32.mxu1 %v1026_v38  ;;  %v862_v54 = vmul.f32 %v1755_v22, %v3135_v12  ;;  %v1028_v20 = vadd.f32 %v2793_v49, %v943_v47  ;;  %v864_v18 = vmul.f32 %v1755_v22, %v2551_v34  ;;  %v861_v30 = vmul.f32 %v1755_v22, %v3136_v55  ;;  %v3141_v38 = vld [vmem:[#allocation15_spill] sm:$0xff] }
 0x164   :  { %v1030_v14 = vadd.f32 %v2799_v9, %v945_v26  ;;  %1764 = vrsqrt.f32 %v807_v25  ;;  %v944_v32 = vmul.f32 %v2803_v50, %v859_v10  ;;  %v863_v7 = vmul.f32 %v1755_v22, %v3137_v51  ;;  %v1759_v45 = vpop.eup %1758  ;;  %v3142_v10 = vld [vmem:[#allocation38_spill] sm:$0xff] }
 0x165   :  { %1223 = vmatmul.mubr.f32.gmra.mrb[14].mxu0 %v1023_v31  ;;  %1368 = vmatmul.mubr.f32.gmra.mrb[14].mxu1 %v1025_v2  ;;  %v947_v48 = vmul.f32 %v2791_v21, %v862_v54  ;;  %v808_v8 = vadd.f32 1e-05, %v792_v28  ;;  %v949_v44 = vmul.f32 %v2795_v29, %v864_v18  ;;  %v946_v33 = vmul.f32 %v2797_v11, %v861_v30  ;;  %v1761_v63 = vpop.eup %1760 }
 0x166   :  { %1227 = vmatprep.mubr.f32.mxu0 %v1028_v20  ;;  %1372 = vmatprep.mubr.f32.mxu1 %v1030_v14  ;;  %v866_v34 = vmul.f32 %v1757_v61, %v2458_v41  ;;  %v1027_v13 = vadd.f32 %v2801_v52, %v942_v17  ;;  %v1029_v40 = vadd.f32 %v2809_v57, %v944_v32  ;;  %v3143_v14 = vld [vmem:[#allocation14_spill] sm:$0xff] }
 0x167   :  { %v948_v37 = vmul.f32 %v2803_v50, %v863_v7  ;;  %v868_v19 = vmul.f32 %v1757_v61, %v2575_v42  ;;  %v1032_v35 = vadd.f32 %v2793_v49, %v947_v48  ;;  %v1034_v60 = vadd.f32 %v2799_v9, %v949_v44  ;;  %v3144_v48 = vld [vmem:[#allocation17_spill] sm:$0xff] }
 0x168   :  { %v951_v27 = vmul.f32 %v2791_v21, %v866_v34  ;;  %v865_v0 = vmul.f32 %v1757_v61, %v3138_v1  ;;  %v1031_v41 = vadd.f32 %v2801_v52, %v946_v33  ;;  %v867_v3 = vmul.f32 %v1757_v61, %v3139_v53  ;;  %v3146_v34 = vld [vmem:[#allocation16_spill] sm:$0xff]  ;;  %v3148_v1 = vld [vmem:[#allocation18_spill] sm:$0xff] }
 0x169   :  { %1228 = vmatmul.mubr.f32.gmra.mrb[16].mxu0 %v1027_v13  ;;  %1373 = vmatmul.mubr.f32.gmra.mrb[16].mxu1 %v1029_v40  ;;  %v953_v43 = vmul.f32 %v2795_v29, %v868_v19  ;;  %1766 = vrsqrt.f32 %v808_v8  ;;  %v1033_v42 = vadd.f32 %v2809_v57, %v948_v37  ;;  %v870_v22 = vmul.f32 %v1759_v45, %v2468_v39  ;;  %v3147_v19 = vld [vmem:[#allocation40_spill] sm:$0xff] }
 0x16a   :  { %1232 = vmatprep.mubr.f32.mxu0 %v1032_v35  ;;  %1377 = vmatprep.mubr.f32.mxu1 %v1034_v60  ;;  %v950_v16 = vmul.f32 %v2797_v11, %v865_v0  ;;  %v1036_v62 = vadd.f32 %v2793_v49, %v951_v27  ;;  %v952_v59 = vmul.f32 %v2803_v50, %v867_v3 }
 0x16b   :  { %v872_v15 = vmul.f32 %v1759_v45, %v2589_v4  ;;  %v869_v5 = vmul.f32 %v1759_v45, %v3140_v6  ;;  %v1038_v25 = vadd.f32 %v2799_v9, %v953_v43  ;;  %v955_v56 = vmul.f32 %v2791_v21, %v870_v22  ;;  %v1763_v28 = vpop.eup %1762  ;;  %v3151_v6 = vld [vmem:[#allocation19_spill] sm:$0xff] }
 0x16c   :  { %v871_v47 = vmul.f32 %v1759_v45, %v3141_v38  ;;  %v874_v61 = vmul.f32 %v1761_v63, %v2495_v58  ;;  %v1035_v31 = vadd.f32 %v2801_v52, %v950_v16  ;;  %v1037_v4 = vadd.f32 %v2809_v57, %v952_v59  ;;  %v3145_v45 = vld [vmem:[#allocation39_spill] sm:$0xff] }
 0x16d   :  { %1233 = vmatmul.mubr.f32.gmra.mrb[18].mxu0 %v1031_v41  ;;  %1378 = vmatmul.mubr.f32.gmra.mrb[18].mxu1 %v1033_v42  ;;  %v957_v39 = vmul.f32 %v2795_v29, %v872_v15  ;;  %v954_v2 = vmul.f32 %v2797_v11, %v869_v5  ;;  %v1040_v17 = vadd.f32 %v2793_v49, %v955_v56  ;;  %v3149_v16 = vld [vmem:[#allocation11_spill] sm:$0xff]  ;;  %v3152_v56 = vld [vmem:[#allocation12_spill] sm:$0xff] }
 0x16e   :  { %1237 = vmatprep.mubr.f32.mxu0 %v1036_v62  ;;  %1382 = vmatprep.mubr.f32.mxu1 %v1038_v25  ;;  %v1765_v26 = vpop.eup %1764  ;;  %v956_v36 = vmul.f32 %v2803_v50, %v871_v47  ;;  %v876_v58 = vmul.f32 %v1761_v63, %v2607_v24  ;;  %v873_v12 = vmul.f32 %v1761_v63, %v3142_v10  ;;  %v3150_v62 = vld [vmem:[#allocation20_spill] sm:$0xff] }
 0x16f   :  { %v1042_v54 = vadd.f32 %v2799_v9, %v957_v39  ;;  %v959_v20 = vmul.f32 %v2791_v21, %v874_v61  ;;  %v875_v18 = vmul.f32 %v1761_v63, %v3143_v14  ;;  %v878_v55 = vmul.f32 %v1763_v28, %v2503_v23 }
 0x170   :  { %v961_v30 = vmul.f32 %v2795_v29, %v876_v58  ;;  %v958_v32 = vmul.f32 %v2797_v11, %v873_v12  ;;  %v880_v51 = vmul.f32 %v1763_v28, %v3144_v48  ;;  %v877_v8 = vmul.f32 %v1763_v28, %v3145_v45 }
 0x171   :  { %1238 = vmatmul.mubr.f32.gmra.mrb[20].mxu0 %v1035_v31  ;;  %1383 = vmatmul.mubr.f32.gmra.mrb[20].mxu1 %v1037_v4  ;;  %v960_v24 = vmul.f32 %v2803_v50, %v875_v18  ;;  %v963_v7 = vmul.f32 %v2791_v21, %v878_v55  ;;  %v1039_v44 = vadd.f32 %v2801_v52, %v954_v2  ;;  %v3153_v2 = vld [vmem:[#allocation22_spill] sm:$0xff] }
 0x172   :  { %1242 = vmatprep.mubr.f32.mxu0 %v1040_v17  ;;  %1387 = vmatprep.mubr.f32.mxu1 %v1042_v54  ;;  %v1041_v23 = vadd.f32 %v2809_v57, %v956_v36  ;;  %v965_v33 = vmul.f32 %v2795_v29, %v880_v51  ;;  %v879_v63 = vmul.f32 %v1763_v28, %v3146_v34 }
 0x173   :  { %v1767_v13 = vpop.eup %1766  ;;  %v1044_v40 = vadd.f32 %v2793_v49, %v959_v20  ;;  %v1046_v37 = vadd.f32 %v2799_v9, %v961_v30  ;;  %v882_v35 = vmul.f32 %v1765_v26, %v3147_v19  ;;  %v1043_v60 = vadd.f32 %v2801_v52, %v958_v32 }
 0x174   :  { %v1045_v27 = vadd.f32 %v2809_v57, %v960_v24  ;;  %v884_v0 = vmul.f32 %v1765_v26, %v3148_v1  ;;  %v1048_v41 = vadd.f32 %v2793_v49, %v963_v7  ;;  %v962_v43 = vmul.f32 %v2797_v11, %v877_v8 }
 0x175   :  { %1243 = vmatmul.mubr.f32.gmra.mrb[22].mxu0 %v1039_v44  ;;  %1388 = vmatmul.mubr.f32.gmra.mrb[22].mxu1 %v1041_v23  ;;  %v964_v53 = vmul.f32 %v2803_v50, %v879_v63  ;;  %v1050_v3 = vadd.f32 %v2799_v9, %v965_v33  ;;  %v967_v42 = vmul.f32 %v2791_v21, %v882_v35 }
 0x176   :  { %1247 = vmatprep.mubr.f32.mxu0 %v1044_v40  ;;  %1392 = vmatprep.mubr.f32.mxu1 %v1046_v37  ;;  %v881_v22 = vmul.f32 %v1765_v26, %v3149_v16  ;;  %v883_v59 = vmul.f32 %v1765_v26, %v3150_v62  ;;  %v969_v15 = vmul.f32 %v2795_v29, %v884_v0 }
 0x177   :  { %v886_v5 = vmul.f32 %v1767_v13, %v3151_v6  ;;  %v888_v25 = vmul.f32 %v1767_v13, %v2676_v46  ;;  %v885_v38 = vmul.f32 %v1767_v13, %v3152_v56  ;;  %v1047_v47 = vadd.f32 %v2801_v52, %v962_v43 }
 0x178   :  { %v1049_v61 = vadd.f32 %v2809_v57, %v964_v53  ;;  %v1052_v39 = vadd.f32 %v2793_v49, %v967_v42  ;;  %v966_v31 = vmul.f32 %v2797_v11, %v881_v22  ;;  %v968_v4 = vmul.f32 %v2803_v50, %v883_v59 }
 0x179   :  { %1248 = vmatmul.mubr.f32.gmra.mrb[24].mxu0 %v1043_v60  ;;  %1393 = vmatmul.mubr.f32.gmra.mrb[24].mxu1 %v1045_v27  ;;  %v970_v28 = vmul.f32 %v2797_v11, %v885_v38  ;;  %v887_v46 = vmul.f32 %v1767_v13, %v3153_v2  ;;  %v1054_v26 = vadd.f32 %v2799_v9, %v969_v15 }
 0x17a   :  { %1252 = vmatprep.mubr.f32.mxu0 %v1048_v41  ;;  %1397 = vmatprep.mubr.f32.mxu1 %v1050_v3  ;;  %v971_v17 = vmul.f32 %v2791_v21, %v886_v5  ;;  %v973_v36 = vmul.f32 %v2795_v29, %v888_v25  ;;  %v1051_v11 = vadd.f32 %v2801_v52, %v966_v31 }
 0x17b   :  { %v1055_v58 = vadd.f32 %v2801_v52, %v970_v28  ;;  %v972_v10 = vmul.f32 %v2803_v50, %v887_v46  ;;  %v1053_v12 = vadd.f32 %v2809_v57, %v968_v4 }
 0x17c   :  { %v1056_v20 = vadd.f32 %v2793_v49, %v971_v17  ;;  %v1058_v21 = vadd.f32 %v2799_v9, %v973_v36 }
 0x17d   :  { %1253 = vmatmul.mubr.f32.gmra.mrb[26].mxu0 %v1047_v47  ;;  %1398 = vmatmul.mubr.f32.gmra.mrb[26].mxu1 %v1049_v61  ;;  %v1057_v54 = vadd.f32 %v2809_v57, %v972_v10 }
 0x17e   :  { %1257 = vmatprep.mubr.f32.mxu0 %v1052_v39  ;;  %1402 = vmatprep.mubr.f32.mxu1 %v1054_v26 }
 0x181   :  { %1258 = vmatmul.mubr.f32.gmra.mrb[28].mxu0 %v1051_v11  ;;  %1403 = vmatmul.mubr.f32.gmra.mrb[28].mxu1 %v1053_v12 }
 0x182   :  { %1262 = vmatprep.mubr.f32.mxu0 %v1056_v20  ;;  %1407 = vmatprep.mubr.f32.mxu1 %v1058_v21 }
 0x185   :  { %1263 = vmatmul.mubr.f32.gmra.mrb[30].mxu0 %v1055_v58  ;;  %1408 = vmatmul.mubr.f32.gmra.mrb[30].mxu1 %v1057_v54 }
 0x21a   :  { %v1541_v29 = vpop.f32.mrb[0].mxu0  ;;  %v1621_v50 = vpop.f32.mrb[0].mxu1 }
 0x21b   :  { %v1542_v14 = vpop.f32.mrb[1].mxu0  ;;  %v1622_v18 = vpop.f32.mrb[1].mxu1 }
 0x21c   :  { %v1543_v55 = vadd.f32 %v1542_v14, %v1541_v29  ;;  %v1623_v52 = vadd.f32 %v1622_v18, %v1621_v50 }
 0x21e   :  { %v1335_v30 = vadd.f32 %v1623_v52, %v1543_v55 }
 0x220   :  { %1413 = vst [vmem:[#allocation6] sm:$0xff] %v1335_v30  ;;  %v1544_v32 = vpop.f32.mrb[2].mxu0  ;;  %v1624_v57 = vpop.f32.mrb[2].mxu1 }
 0x221   :  { %v1545_v48 = vpop.f32.mrb[3].mxu0  ;;  %v1625_v49 = vpop.f32.mrb[3].mxu1 }
 0x222   :  { %v1546_v51 = vadd.f32 %v1545_v48, %v1544_v32  ;;  %v1626_v9 = vadd.f32 %v1625_v49, %v1624_v57 }
 0x224   :  { %v1340_v24 = vadd.f32 %v1626_v9, %v1546_v51  ;;  %v1547_v7 = vpop.f32.mrb[4].mxu0  ;;  %v1627_v45 = vpop.f32.mrb[4].mxu1 }
 0x225   :  { %v1548_v8 = vpop.f32.mrb[5].mxu0  ;;  %v1628_v44 = vpop.f32.mrb[5].mxu1 }
 0x226   :  { %1414 = vst [vmem:[#allocation6 + $0x8] sm:$0xff] %v1340_v24  ;;  %v1549_v23 = vadd.f32 %v1548_v8, %v1547_v7  ;;  %v1629_v33 = vadd.f32 %v1628_v44, %v1627_v45 }
 0x228   :  { %v1345_v34 = vadd.f32 %v1629_v33, %v1549_v23  ;;  %v1550_v63 = vpop.f32.mrb[6].mxu0  ;;  %v1630_v13 = vpop.f32.mrb[6].mxu1 }
 0x229   :  { %v1551_v40 = vpop.f32.mrb[7].mxu0  ;;  %v1631_v37 = vpop.f32.mrb[7].mxu1 }
 0x22a   :  { %1415 = vst [vmem:[#allocation6 + $0x10] sm:$0xff] %v1345_v34  ;;  %v1552_v19 = vadd.f32 %v1551_v40, %v1550_v63  ;;  %v1632_v35 = vadd.f32 %v1631_v37, %v1630_v13 }
 0x22c   :  { %v1350_v60 = vadd.f32 %v1632_v35, %v1552_v19  ;;  %v1553_v27 = vpop.f32.mrb[8].mxu0  ;;  %v1633_v1 = vpop.f32.mrb[8].mxu1 }
 0x22d   :  { %v1554_v0 = vpop.f32.mrb[9].mxu0  ;;  %v1634_v41 = vpop.f32.mrb[9].mxu1 }
 0x22e   :  { %1416 = vst [vmem:[#allocation6 + $0x18] sm:$0xff] %v1350_v60  ;;  %v1555_v43 = vadd.f32 %v1554_v0, %v1553_v27  ;;  %v1635_v53 = vadd.f32 %v1634_v41, %v1633_v1 }
 0x230   :  { %v1355_v3 = vadd.f32 %v1635_v53, %v1555_v43  ;;  %v1556_v42 = vpop.f32.mrb[10].mxu0  ;;  %v1636_v16 = vpop.f32.mrb[10].mxu1 }
 0x231   :  { %v1557_v22 = vpop.f32.mrb[11].mxu0  ;;  %v1637_v62 = vpop.f32.mrb[11].mxu1 }
 0x232   :  { %1417 = vst [vmem:[#allocation6 + $0x20] sm:$0xff] %v1355_v3  ;;  %v1558_v59 = vadd.f32 %v1557_v22, %v1556_v42  ;;  %v1638_v15 = vadd.f32 %v1637_v62, %v1636_v16 }
 0x234   :  { %v1360_v6 = vadd.f32 %v1638_v15, %v1558_v59  ;;  %v1559_v5 = vpop.f32.mrb[12].mxu0  ;;  %v1639_v25 = vpop.f32.mrb[12].mxu1 }
 0x235   :  { %v1560_v56 = vpop.f32.mrb[13].mxu0  ;;  %v1640_v38 = vpop.f32.mrb[13].mxu1 }
 0x236   :  { %1418 = vst [vmem:[#allocation6 + $0x28] sm:$0xff] %v1360_v6  ;;  %v1561_v47 = vadd.f32 %v1560_v56, %v1559_v5  ;;  %v1641_v61 = vadd.f32 %v1640_v38, %v1639_v25 }
 0x238   :  { %v1365_v28 = vadd.f32 %v1641_v61, %v1561_v47  ;;  %v1562_v39 = vpop.f32.mrb[14].mxu0  ;;  %v1642_v31 = vpop.f32.mrb[14].mxu1 }
 0x239   :  { %v1563_v4 = vpop.f32.mrb[15].mxu0  ;;  %v1643_v2 = vpop.f32.mrb[15].mxu1 }
 0x23a   :  { %1419 = vst [vmem:[#allocation6 + $0x30] sm:$0xff] %v1365_v28  ;;  %v1564_v46 = vadd.f32 %v1563_v4, %v1562_v39  ;;  %v1644_v26 = vadd.f32 %v1643_v2, %v1642_v31 }
 0x23c   :  { %v1370_v17 = vadd.f32 %v1644_v26, %v1564_v46  ;;  %v1565_v36 = vpop.f32.mrb[16].mxu0  ;;  %v1645_v58 = vpop.f32.mrb[16].mxu1 }
 0x23d   :  { %v1566_v10 = vpop.f32.mrb[17].mxu0  ;;  %v1646_v11 = vpop.f32.mrb[17].mxu1 }
 0x23e   :  { %1420 = vst [vmem:[#allocation6 + $0x38] sm:$0xff] %v1370_v17  ;;  %v1567_v12 = vadd.f32 %v1566_v10, %v1565_v36  ;;  %v1647_v54 = vadd.f32 %v1646_v11, %v1645_v58 }
 0x240   :  { %v1375_v20 = vadd.f32 %v1647_v54, %v1567_v12  ;;  %v1568_v21 = vpop.f32.mrb[18].mxu0  ;;  %v1648_v29 = vpop.f32.mrb[18].mxu1 }
 0x241   :  { %v1569_v50 = vpop.f32.mrb[19].mxu0  ;;  %v1649_v14 = vpop.f32.mrb[19].mxu1 }
 0x242   :  { %1421 = vst [vmem:[#allocation6 + $0x40] sm:$0xff] %v1375_v20  ;;  %v1570_v18 = vadd.f32 %v1569_v50, %v1568_v21  ;;  %v1650_v55 = vadd.f32 %v1649_v14, %v1648_v29 }
 0x244   :  { %v1380_v52 = vadd.f32 %v1650_v55, %v1570_v18  ;;  %v1571_v30 = vpop.f32.mrb[20].mxu0  ;;  %v1651_v32 = vpop.f32.mrb[20].mxu1 }
 0x245   :  { %v1572_v57 = vpop.f32.mrb[21].mxu0  ;;  %v1652_v48 = vpop.f32.mrb[21].mxu1 }
 0x246   :  { %1422 = vst [vmem:[#allocation6 + $0x48] sm:$0xff] %v1380_v52  ;;  %v1573_v49 = vadd.f32 %v1572_v57, %v1571_v30  ;;  %v1653_v51 = vadd.f32 %v1652_v48, %v1651_v32 }
 0x248   :  { %v1385_v9 = vadd.f32 %v1653_v51, %v1573_v49  ;;  %v1574_v24 = vpop.f32.mrb[22].mxu0  ;;  %v1654_v7 = vpop.f32.mrb[22].mxu1 }
 0x249   :  { %v1575_v45 = vpop.f32.mrb[23].mxu0  ;;  %v1655_v8 = vpop.f32.mrb[23].mxu1 }
 0x24a   :  { %1423 = vst [vmem:[#allocation6 + $0x50] sm:$0xff] %v1385_v9  ;;  %v1576_v44 = vadd.f32 %v1575_v45, %v1574_v24  ;;  %v1656_v23 = vadd.f32 %v1655_v8, %v1654_v7 }
 0x24c   :  { %v1390_v33 = vadd.f32 %v1656_v23, %v1576_v44  ;;  %v1577_v34 = vpop.f32.mrb[24].mxu0  ;;  %v1657_v63 = vpop.f32.mrb[24].mxu1 }
 0x24d   :  { %v1578_v13 = vpop.f32.mrb[25].mxu0  ;;  %v1658_v40 = vpop.f32.mrb[25].mxu1 }
 0x24e   :  { %1424 = vst [vmem:[#allocation6 + $0x58] sm:$0xff] %v1390_v33  ;;  %v1579_v37 = vadd.f32 %v1578_v13, %v1577_v34  ;;  %v1659_v19 = vadd.f32 %v1658_v40, %v1657_v63 }
 0x250   :  { %v1395_v35 = vadd.f32 %v1659_v19, %v1579_v37  ;;  %v1580_v60 = vpop.f32.mrb[26].mxu0  ;;  %v1660_v27 = vpop.f32.mrb[26].mxu1 }
 0x251   :  { %v1581_v1 = vpop.f32.mrb[27].mxu0  ;;  %v1661_v0 = vpop.f32.mrb[27].mxu1 }
 0x252   :  { %1425 = vst [vmem:[#allocation6 + $0x60] sm:$0xff] %v1395_v35  ;;  %v1582_v41 = vadd.f32 %v1581_v1, %v1580_v60  ;;  %v1662_v43 = vadd.f32 %v1661_v0, %v1660_v27 }
 0x254   :  { %v1400_v53 = vadd.f32 %v1662_v43, %v1582_v41  ;;  %v1583_v3 = vpop.f32.mrb[28].mxu0  ;;  %v1663_v42 = vpop.f32.mrb[28].mxu1 }
 0x255   :  { %v1584_v16 = vpop.f32.mrb[29].mxu0  ;;  %v1664_v22 = vpop.f32.mrb[29].mxu1 }
 0x256   :  { %1426 = vst [vmem:[#allocation6 + $0x68] sm:$0xff] %v1400_v53  ;;  %v1585_v62 = vadd.f32 %v1584_v16, %v1583_v3  ;;  %v1665_v59 = vadd.f32 %v1664_v22, %v1663_v42 }
 0x258   :  { %v1405_v15 = vadd.f32 %v1665_v59, %v1585_v62  ;;  %v1586_v6 = vpop.f32.mrb[30].mxu0  ;;  %v1666_v5 = vpop.f32.mrb[30].mxu1 }
 0x259   :  { %v1587_v25 = vpop.f32.mrb[31].mxu0  ;;  %v1667_v56 = vpop.f32.mrb[31].mxu1 }
 0x25a   :  { %1427 = vst [vmem:[#allocation6 + $0x70] sm:$0xff] %v1405_v15  ;;  %v1588_v38 = vadd.f32 %v1587_v25, %v1586_v6  ;;  %v1668_v47 = vadd.f32 %v1667_v56, %v1666_v5 }
 0x25c   :  { %v1410_v61 = vadd.f32 %v1668_v47, %v1588_v38 }
 0x25e   :  { %1428 = vst [vmem:[#allocation6 + $0x78] sm:$0xff] %v1410_v61 }
 0x25f   :  { %1779 = shalt.err (!%p1776_p4)
}
 0x260   :  { %s1780_s11 = scalar_lea.hbm %s3018_s7, 2048 }
 0x261   :  { %p1781_p5 = scmp.ne.s32.totalorder %s3018_s7, %s1780_s11  ;;  %p1784_p6 = scmp.lt.u32.totalorder %s1780_s11, %s3018_s7 }
 0x263   :  { %p1786_p7 = pnand %p1784_p6, %p1781_p5 }
 0x265   :  { %1789 = shalt.err (!%p1786_p7)
}
 0x266   :  { %s1793_s15 = smov 128   ;;  %s1794_s16 = smov 8  }
 0x267   :  { %1440 = dma.vmem_to_hbm [thread:$0]  %s1435_s5, 2048, %s3018_s7, [#allocation7], %s1793_s15, %s1793_s15, %s1794_s16  }
 0x268   :  { %1790 = dma.done.wait [#allocation7], 2048  }
 0x269   :  { %1791 = vsyncadd [#allocation7], 4294965248 }
 0x26a   :  { %1444 = vsyncpa [#allocation7], 1 }

</bundles_post_ra>
